<compile_context>
chip_gen: v5e
topology: v5e:2x2
jax: 0.10.0
libtpu: 0.0.40
codegen_flags: <defaults>
</compile_context>

<pallas_src>
import jax
import jax.numpy as jnp
from jax.experimental import pallas as pl
from jax.experimental.pallas import tpu as pltpu


# MXU matmul input dtype (accumulation stays f32 via preferred_element_type).
MXU_DTYPE = jnp.bfloat16


# ----------------------------------------------------------------------------
# Static (trace-time) per-layer plans
# ----------------------------------------------------------------------------
def _plan_conv(L_in, C_in, C_out, K, stride, pad, act):
    L_out = (L_in + 2 * pad - K) // stride + 1
    return dict(kind="conv", L_in=L_in, L_out=L_out, C_in=C_in, C_out=C_out,
                K=K, stride=stride, act=act, pad_left=pad, pad_right=pad)


def _plan_convT(L_in, C_in, C_out, K, stride, pad, act):
    # Polyphase decomposition of PyTorch ConvTranspose1d (output_padding=0):
    #   out[s*q + r, :] = sum_{(k, ofs) in taps[r]} x[q + ofs, :] @ W_k
    L_out = (L_in - 1) * stride - 2 * pad + K
    phases = []
    min_ofs, max_overhang = 0, 0
    for r in range(stride):
        M_r = -(-(L_out - r) // stride)               # #outputs in phase r
        taps = []
        for k in range(K):
            if (r + pad - k) % stride == 0:
                ofs = (r + pad - k) // stride
                taps.append((k, ofs))
                min_ofs = min(min_ofs, ofs)
                max_overhang = max(max_overhang, (M_r - 1 + ofs) - (L_in - 1))
        phases.append((r, M_r, tuple(taps)))
    return dict(kind="convT", L_in=L_in, L_out=L_out, C_in=C_in, C_out=C_out,
                K=K, stride=stride, act=act,
                pad_left=max(0, -min_ofs), pad_right=max(0, max_overhang),
                phases=tuple(phases))


# ----------------------------------------------------------------------------
# Fused kernel: all layers, activations resident in VMEM scratch
# ----------------------------------------------------------------------------
def _make_kernel(cfgs):
    n = len(cfgs)

    def _act(v, act):
        if act == "relu":
            return jnp.maximum(v, 0.0)
        if act == "tanh":
            return jnp.tanh(v)
        return v

    def _chan_mix(x_slice, w_ref, k, c_in):
        wk = w_ref[k]                                  # (C_in, C_out)
        if c_in == 1:
            # Contraction depth 1: broadcast FMA on the VPU (f32 weights).
            return x_slice * wk
        return jnp.dot(x_slice.astype(MXU_DTYPE), wk,
                       preferred_element_type=jnp.float32)

    def kernel(*args):
        x_ref = args[0]
        w_refs = [args[1 + 2 * i] for i in range(n)]
        b_refs = [args[2 + 2 * i] for i in range(n)]
        o_ref = args[1 + 2 * n]
        bufs = list(args[2 + 2 * n: 2 + 3 * n])
        fin = args[2 + 3 * n]                          # final (L_out, C_out) stage

        # Zero ONLY the pad rows; interiors are fully overwritten each step.
        # Kept unconditional so it stays correct under core-parallel splitting.
        for cfg, buf in zip(cfgs, bufs):
            padl, padr = cfg["pad_left"], cfg["pad_right"]
            C = cfg["C_in"]
            if padl > 0:
                buf[0:padl, :] = jnp.zeros((padl, C), jnp.float32)
            if padr > 0:
                buf[padl + cfg["L_in"]:, :] = jnp.zeros((padr, C), jnp.float32)

        # Stage this batch element's input into padded buffer 0 (channels-last).
        c0 = cfgs[0]
        bufs[0][c0["pad_left"]:c0["pad_left"] + c0["L_in"], :] = (
            x_ref[...].astype(jnp.float32))

        for i, cfg in enumerate(cfgs):
            src = bufs[i]
            if i + 1 < n:
                dst, dst_off = bufs[i + 1], cfgs[i + 1]["pad_left"]
            else:
                dst, dst_off = fin, 0
            L_out, C_in, C_out = cfg["L_out"], cfg["C_in"], cfg["C_out"]
            s = cfg["stride"]
            bias = b_refs[i][...]                      # (1, C_out) f32

            if cfg["kind"] == "conv":
                # out[l] = sum_k src[s*l + k] @ W_k — each tap is a strided
                # sublane read of the padded buffer; no downsample matmul.
                acc = None
                for k in range(cfg["K"]):
                    if s == 1:
                        xs = src[k:k + L_out, :]
                    else:
                        xs = src[pl.ds(k, L_out, stride=s), :]
                    y = _chan_mix(xs, w_refs[i], k, C_in)
                    acc = y if acc is None else acc + y
                out = _act(acc + bias, cfg["act"]).astype(jnp.float32)
                dst[dst_off:dst_off + L_out, :] = out
            else:
                # Polyphase ConvTranspose1d: finish each phase (bias + act) and
                # scatter it with a strided store — no interleave matmul, no
                # cross-phase add, no zero-stuffed intermediate.
                for (r, M_r, taps) in cfg["phases"]:
                    acc = None
                    for (k, ofs) in taps:
                        start = cfg["pad_left"] + ofs
                        y = _chan_mix(src[start:start + M_r, :],
                                      w_refs[i], k, C_in)
                        acc = y if acc is None else acc + y
                    if acc is None:                    # tap-free phase: bias only
                        acc = jnp.zeros((M_r, C_out), jnp.float32)
                    ph = _act(acc + bias, cfg["act"]).astype(jnp.float32)
                    if s == 1:
                        dst[dst_off + r:dst_off + r + M_r, :] = ph
                    else:
                        dst[pl.ds(dst_off + r, M_r, stride=s), :] = ph

        # Lane-dense output: (L_out, C_out) -> (C_out, L_out), one dense store.
        o_ref[...] = jnp.transpose(fin[...], (1, 0)).astype(o_ref.dtype)

    return kernel


def _fused_autoencoder(x_cl, packed, cfgs):
    """x_cl: (B, L, C_in) channels-last.  Returns (B, C_out, L_out) (NCL)."""
    B = x_cl.shape[0]
    L_f, C_f = cfgs[-1]["L_out"], cfgs[-1]["C_out"]

    inputs = [x_cl]
    in_specs = [pl.BlockSpec((None, cfgs[0]["L_in"], cfgs[0]["C_in"]),
                             lambda b: (b, 0, 0))]
    for (w, bias) in packed:
        inputs.extend([w, bias])
        in_specs.append(pl.BlockSpec(w.shape, lambda b: (0, 0, 0)))
        in_specs.append(pl.BlockSpec(bias.shape, lambda b: (0, 0)))

    # One padded channels-last activation buffer per layer input (+ final
    # staging tile).  f32: strided VMEM access wants 32-bit elements; bf16
    # happens only at the MXU operand boundary.
    scratch = [
        pltpu.VMEM((cfg["pad_left"] + cfg["L_in"] + cfg["pad_right"], cfg["C_in"]),
                   jnp.float32)
        for cfg in cfgs
    ]
    scratch.append(pltpu.VMEM((L_f, C_f), jnp.float32))

    return pl.pallas_call(
        _make_kernel(cfgs),
        out_shape=jax.ShapeDtypeStruct((B, C_f, L_f), jnp.float32),
        grid=(B,),
        in_specs=in_specs,
        out_specs=pl.BlockSpec((None, C_f, L_f), lambda b: (b, 0, 0)),
        scratch_shapes=scratch,
        compiler_params=pltpu.CompilerParams(
            dimension_semantics=("parallel",)),
    )(*inputs)


# ----------------------------------------------------------------------------
# Parameters (PyTorch-like uniform fan-in init) + one-time packing
# ----------------------------------------------------------------------------
def _init_conv(key, c_out, c_in, k):
    bound = 1.0 / (c_in * k) ** 0.5
    kw, kb = jax.random.split(key)
    w = jax.random.uniform(kw, (c_out, c_in, k), jnp.float32, -bound, bound)
    b = jax.random.uniform(kb, (c_out,), jnp.float32, -bound, bound)
    return w, b


def _init_convT(key, c_in, c_out, k):
    bound = 1.0 / (c_in * k) ** 0.5
    kw, kb = jax.random.split(key)
    w = jax.random.uniform(kw, (c_in, c_out, k), jnp.float32, -bound, bound)
    b = jax.random.uniform(kb, (c_out,), jnp.float32, -bound, bound)
    return w, b


def init_audio_autoencoder(key, in_channels=1, hidden_channels=32, latent_dim=16,
                           num_encoder_layers=3, num_decoder_layers=3, k=4):
    keys = jax.random.split(key, num_encoder_layers + num_decoder_layers)
    enc, dec = [], []
    enc_ch = [in_channels] + [hidden_channels] * (num_encoder_layers - 1) + [latent_dim]
    for i in range(num_encoder_layers):
        enc.append(_init_conv(keys[i], enc_ch[i + 1], enc_ch[i], k))
    dec_ch = [latent_dim] + [hidden_channels] * (num_decoder_layers - 1) + [in_channels]
    for i in range(num_decoder_layers):
        dec.append(_init_convT(keys[num_encoder_layers + i], dec_ch[i], dec_ch[i + 1], k))
    return {"encoder": enc, "decoder": dec}


def pack_params(params):
    """One-time re-pack into the kernel layout (outside jit):
    weights -> (K, C_in, C_out); biases -> (1, C_out) f32.
    Depth-1 (C_in == 1) layers keep f32 weights (VPU path, never hit the MXU)."""
    packed = []
    for (w, b) in params["encoder"]:        # Conv1d weight: (C_out, C_in, K)
        wd = jnp.float32 if w.shape[1] == 1 else MXU_DTYPE
        packed.append((jnp.transpose(w, (2, 1, 0)).astype(wd),
                       b.reshape(1, -1).astype(jnp.float32)))
    for (w, b) in params["decoder"]:        # ConvTranspose1d weight: (C_in, C_out, K)
        wd = jnp.float32 if w.shape[0] == 1 else MXU_DTYPE
        packed.append((jnp.transpose(w, (2, 0, 1)).astype(wd),
                       b.reshape(1, -1).astype(jnp.float32)))
    return packed


def make_forward(layer_meta):
    """layer_meta: static tuple of (kind, K, stride, pad, act) per layer."""
    def forward(packed, x):                 # x: (B, C, L)  PyTorch NCL layout
        cfgs = []
        L_cur = x.shape[2]
        for (kind, K, s, p, act), (w, _) in zip(layer_meta, packed):
            c_in, c_out = int(w.shape[1]), int(w.shape[2])
            plan = _plan_conv if kind == "conv" else _plan_convT
            cfg = plan(L_cur, c_in, c_out, K, s, p, act)
            cfgs.append(cfg)
            L_cur = cfg["L_out"]
        x_cl = jnp.transpose(x, (0, 2, 1))  # NCL -> NLC (once, at entry)
        # Kernel emits lane-dense NCL directly — no exit transpose.
        return _fused_autoencoder(x_cl, packed, cfgs)
    return forward


if __name__ == "__main__":
    key = jax.random.PRNGKey(0)
    k_param, k_x = jax.random.split(key)

    B, C_in, L = 2, 1, 64
    hidden, latent, K = 32, 16, 4
    n_enc = n_dec = 3

    params = init_audio_autoencoder(k_param, in_channels=C_in,
                                    hidden_channels=hidden, latent_dim=latent,
                                    num_encoder_layers=n_enc,
                                    num_decoder_layers=n_dec, k=K)
    packed = pack_params(params)            # hoisted: transpose/cast done once

    meta = tuple([("conv", K, 2, 1, "relu")] * n_enc
                 + [("convT", K, 2, 1, "relu")] * (n_dec - 1)
                 + [("convT", K, 2, 1, "tanh")])
    forward = jax.jit(make_forward(meta))

    x = jax.random.normal(k_x, (B, C_in, L), dtype=jnp.float32)
    y = jax.block_until_ready(forward(packed, x))

    assert y.shape == (B, C_in, L), y.shape
    assert bool(jnp.all(jnp.isfinite(y)))
    print("KERNEL_OK")
</pallas_src>

<mosaic_0001>
module attributes {stable_mosaic.version = 11 : i64} {
  func.func @kernel(%arg0: i32, %arg1: memref<1x64x1xf32, #tpu.memory_space<vmem>>, %arg2: memref<4x1x32xf32, #tpu.memory_space<vmem>>, %arg3: memref<1x32xf32, #tpu.memory_space<vmem>>, %arg4: memref<4x32x32xbf16, #tpu.memory_space<vmem>>, %arg5: memref<1x32xf32, #tpu.memory_space<vmem>>, %arg6: memref<4x32x16xbf16, #tpu.memory_space<vmem>>, %arg7: memref<1x16xf32, #tpu.memory_space<vmem>>, %arg8: memref<4x16x32xbf16, #tpu.memory_space<vmem>>, %arg9: memref<1x32xf32, #tpu.memory_space<vmem>>, %arg10: memref<4x32x32xbf16, #tpu.memory_space<vmem>>, %arg11: memref<1x32xf32, #tpu.memory_space<vmem>>, %arg12: memref<4x32x1xbf16, #tpu.memory_space<vmem>>, %arg13: memref<1x1xf32, #tpu.memory_space<vmem>>, %arg14: memref<1x1x64xf32, #tpu.memory_space<vmem>>, %arg15: memref<66x1xf32, #tpu.memory_space<vmem>>, %arg16: memref<34x32xf32, #tpu.memory_space<vmem>>, %arg17: memref<18x32xf32, #tpu.memory_space<vmem>>, %arg18: memref<10x16xf32, #tpu.memory_space<vmem>>, %arg19: memref<18x32xf32, #tpu.memory_space<vmem>>, %arg20: memref<34x32xf32, #tpu.memory_space<vmem>>, %arg21: memref<64x1xf32, #tpu.memory_space<vmem>>) attributes {dimension_semantics = [#tpu.dimension_semantics<parallel>], iteration_bounds = array<i64: 2>, scalar_prefetch = 0 : i64, scratch_operands = 7 : i64, tpu.core_type = #tpu.core_type<tc>, window_params = [{transform_indices = @transform_0, window_bounds = array<i64: 1, 64, 1>}, {pipeline_mode = #tpu.pipeline_mode<synchronous>, transform_indices = @transform_1, window_bounds = array<i64: 4, 1, 32>}, {pipeline_mode = #tpu.pipeline_mode<synchronous>, transform_indices = @transform_2, window_bounds = array<i64: 1, 32>}, {pipeline_mode = #tpu.pipeline_mode<synchronous>, transform_indices = @transform_3, window_bounds = array<i64: 4, 32, 32>}, {pipeline_mode = #tpu.pipeline_mode<synchronous>, transform_indices = @transform_4, window_bounds = array<i64: 1, 32>}, {pipeline_mode = #tpu.pipeline_mode<synchronous>, transform_indices = @transform_5, window_bounds = array<i64: 4, 32, 16>}, {pipeline_mode = #tpu.pipeline_mode<synchronous>, transform_indices = @transform_6, window_bounds = array<i64: 1, 16>}, {pipeline_mode = #tpu.pipeline_mode<synchronous>, transform_indices = @transform_7, window_bounds = array<i64: 4, 16, 32>}, {pipeline_mode = #tpu.pipeline_mode<synchronous>, transform_indices = @transform_8, window_bounds = array<i64: 1, 32>}, {pipeline_mode = #tpu.pipeline_mode<synchronous>, transform_indices = @transform_9, window_bounds = array<i64: 4, 32, 32>}, {pipeline_mode = #tpu.pipeline_mode<synchronous>, transform_indices = @transform_10, window_bounds = array<i64: 1, 32>}, {pipeline_mode = #tpu.pipeline_mode<synchronous>, transform_indices = @transform_11, window_bounds = array<i64: 4, 32, 1>}, {pipeline_mode = #tpu.pipeline_mode<synchronous>, transform_indices = @transform_12, window_bounds = array<i64: 1, 1>}, {transform_indices = @transform_13, window_bounds = array<i64: 1, 1, 64>}]} {
    %cst = arith.constant 0.000000e+00 : f32
    %0 = vector.broadcast %cst : f32 to vector<1x1xf32>
    %c0 = arith.constant 0 : index
    %c0_0 = arith.constant 0 : index
    %1 = vector.load %arg15[%c0, %c0_0] : memref<66x1xf32, #tpu.memory_space<vmem>>, vector<1x1xf32>
    tpu.vector_store %arg15[%c0, %c0_0], %0 {strides = array<i32>} : memref<66x1xf32, #tpu.memory_space<vmem>>, vector<1x1xf32>,
    %cst_1 = arith.constant 0.000000e+00 : f32
    %2 = vector.broadcast %cst_1 : f32 to vector<1x1xf32>
    %c65 = arith.constant 65 : index
    %c0_2 = arith.constant 0 : index
    %3 = vector.load %arg15[%c65, %c0_2] : memref<66x1xf32, #tpu.memory_space<vmem>>, vector<1x1xf32>
    tpu.vector_store %arg15[%c65, %c0_2], %2 {strides = array<i32>} : memref<66x1xf32, #tpu.memory_space<vmem>>, vector<1x1xf32>,
    %cst_3 = arith.constant 0.000000e+00 : f32
    %4 = vector.broadcast %cst_3 : f32 to vector<1x32xf32>
    %c0_4 = arith.constant 0 : index
    %c0_5 = arith.constant 0 : index
    %5 = vector.load %arg16[%c0_4, %c0_5] : memref<34x32xf32, #tpu.memory_space<vmem>>, vector<1x32xf32>
    tpu.vector_store %arg16[%c0_4, %c0_5], %4 {strides = array<i32>} : memref<34x32xf32, #tpu.memory_space<vmem>>, vector<1x32xf32>,
    %cst_6 = arith.constant 0.000000e+00 : f32
    %6 = vector.broadcast %cst_6 : f32 to vector<1x32xf32>
    %c33 = arith.constant 33 : index
    %c0_7 = arith.constant 0 : index
    %7 = vector.load %arg16[%c33, %c0_7] : memref<34x32xf32, #tpu.memory_space<vmem>>, vector<1x32xf32>
    tpu.vector_store %arg16[%c33, %c0_7], %6 {strides = array<i32>} : memref<34x32xf32, #tpu.memory_space<vmem>>, vector<1x32xf32>,
    %cst_8 = arith.constant 0.000000e+00 : f32
    %8 = vector.broadcast %cst_8 : f32 to vector<1x32xf32>
    %c0_9 = arith.constant 0 : index
    %c0_10 = arith.constant 0 : index
    %9 = vector.load %arg17[%c0_9, %c0_10] : memref<18x32xf32, #tpu.memory_space<vmem>>, vector<1x32xf32>
    tpu.vector_store %arg17[%c0_9, %c0_10], %8 {strides = array<i32>} : memref<18x32xf32, #tpu.memory_space<vmem>>, vector<1x32xf32>,
    %cst_11 = arith.constant 0.000000e+00 : f32
    %10 = vector.broadcast %cst_11 : f32 to vector<1x32xf32>
    %c17 = arith.constant 17 : index
    %c0_12 = arith.constant 0 : index
    %11 = vector.load %arg17[%c17, %c0_12] : memref<18x32xf32, #tpu.memory_space<vmem>>, vector<1x32xf32>
    tpu.vector_store %arg17[%c17, %c0_12], %10 {strides = array<i32>} : memref<18x32xf32, #tpu.memory_space<vmem>>, vector<1x32xf32>,
    %cst_13 = arith.constant 0.000000e+00 : f32
    %12 = vector.broadcast %cst_13 : f32 to vector<1x16xf32>
    %c0_14 = arith.constant 0 : index
    %c0_15 = arith.constant 0 : index
    %13 = vector.load %arg18[%c0_14, %c0_15] : memref<10x16xf32, #tpu.memory_space<vmem>>, vector<1x16xf32>
    tpu.vector_store %arg18[%c0_14, %c0_15], %12 {strides = array<i32>} : memref<10x16xf32, #tpu.memory_space<vmem>>, vector<1x16xf32>,
    %cst_16 = arith.constant 0.000000e+00 : f32
    %14 = vector.broadcast %cst_16 : f32 to vector<1x16xf32>
    %c9 = arith.constant 9 : index
    %c0_17 = arith.constant 0 : index
    %15 = vector.load %arg18[%c9, %c0_17] : memref<10x16xf32, #tpu.memory_space<vmem>>, vector<1x16xf32>
    tpu.vector_store %arg18[%c9, %c0_17], %14 {strides = array<i32>} : memref<10x16xf32, #tpu.memory_space<vmem>>, vector<1x16xf32>,
    %cst_18 = arith.constant 0.000000e+00 : f32
    %16 = vector.broadcast %cst_18 : f32 to vector<1x32xf32>
    %c0_19 = arith.constant 0 : index
    %c0_20 = arith.constant 0 : index
    %17 = vector.load %arg19[%c0_19, %c0_20] : memref<18x32xf32, #tpu.memory_space<vmem>>, vector<1x32xf32>
    tpu.vector_store %arg19[%c0_19, %c0_20], %16 {strides = array<i32>} : memref<18x32xf32, #tpu.memory_space<vmem>>, vector<1x32xf32>,
    %cst_21 = arith.constant 0.000000e+00 : f32
    %18 = vector.broadcast %cst_21 : f32 to vector<1x32xf32>
    %c17_22 = arith.constant 17 : index
    %c0_23 = arith.constant 0 : index
    %19 = vector.load %arg19[%c17_22, %c0_23] : memref<18x32xf32, #tpu.memory_space<vmem>>, vector<1x32xf32>
    tpu.vector_store %arg19[%c17_22, %c0_23], %18 {strides = array<i32>} : memref<18x32xf32, #tpu.memory_space<vmem>>, vector<1x32xf32>,
    %cst_24 = arith.constant 0.000000e+00 : f32
    %20 = vector.broadcast %cst_24 : f32 to vector<1x32xf32>
    %c0_25 = arith.constant 0 : index
    %c0_26 = arith.constant 0 : index
    %21 = vector.load %arg20[%c0_25, %c0_26] : memref<34x32xf32, #tpu.memory_space<vmem>>, vector<1x32xf32>
    tpu.vector_store %arg20[%c0_25, %c0_26], %20 {strides = array<i32>} : memref<34x32xf32, #tpu.memory_space<vmem>>, vector<1x32xf32>,
    %cst_27 = arith.constant 0.000000e+00 : f32
    %22 = vector.broadcast %cst_27 : f32 to vector<1x32xf32>
    %c33_28 = arith.constant 33 : index
    %c0_29 = arith.constant 0 : index
    %23 = vector.load %arg20[%c33_28, %c0_29] : memref<34x32xf32, #tpu.memory_space<vmem>>, vector<1x32xf32>
    tpu.vector_store %arg20[%c33_28, %c0_29], %22 {strides = array<i32>} : memref<34x32xf32, #tpu.memory_space<vmem>>, vector<1x32xf32>,
    %c0_30 = arith.constant 0 : index
    %c0_31 = arith.constant 0 : index
    %c0_32 = arith.constant 0 : index
    %24 = vector.load %arg1[%c0_30, %c0_31, %c0_32] : memref<1x64x1xf32, #tpu.memory_space<vmem>>, vector<1x64x1xf32>
    %25 = vector.shape_cast %24 : vector<1x64x1xf32> to vector<64x1xf32>
    %c1 = arith.constant 1 : index
    %c0_33 = arith.constant 0 : index
    %26 = vector.load %arg15[%c1, %c0_33] : memref<66x1xf32, #tpu.memory_space<vmem>>, vector<64x1xf32>
    tpu.vector_store %arg15[%c1, %c0_33], %25 {strides = array<i32>} : memref<66x1xf32, #tpu.memory_space<vmem>>, vector<64x1xf32>,
    %c0_34 = arith.constant 0 : index
    %c0_35 = arith.constant 0 : index
    %27 = vector.load %arg3[%c0_34, %c0_35] : memref<1x32xf32, #tpu.memory_space<vmem>>, vector<1x32xf32>
    %c0_36 = arith.constant 0 : index
    %c0_37 = arith.constant 0 : index
    %28 = tpu.strided_load %arg15[%c0_36, %c0_37] {strides = array<i32: 2, 1>} : memref<66x1xf32, #tpu.memory_space<vmem>>, vector<32x1xf32>
    %c0_38 = arith.constant 0 : index
    %c0_39 = arith.constant 0 : index
    %c0_40 = arith.constant 0 : index
    %29 = vector.load %arg2[%c0_38, %c0_39, %c0_40] : memref<4x1x32xf32, #tpu.memory_space<vmem>>, vector<1x1x32xf32>
    %30 = vector.shape_cast %29 : vector<1x1x32xf32> to vector<1x32xf32>
    %31 = vector.broadcast %28 : vector<32x1xf32> to vector<32x32xf32>
    %32 = vector.broadcast %30 : vector<1x32xf32> to vector<32x32xf32>
    %33 = arith.mulf %31, %32 : vector<32x32xf32>
    %c1_41 = arith.constant 1 : index
    %c0_42 = arith.constant 0 : index
    %34 = tpu.strided_load %arg15[%c1_41, %c0_42] {strides = array<i32: 2, 1>} : memref<66x1xf32, #tpu.memory_space<vmem>>, vector<32x1xf32>
    %c1_43 = arith.constant 1 : index
    %c0_44 = arith.constant 0 : index
    %c0_45 = arith.constant 0 : index
    %35 = vector.load %arg2[%c1_43, %c0_44, %c0_45] : memref<4x1x32xf32, #tpu.memory_space<vmem>>, vector<1x1x32xf32>
    %36 = vector.shape_cast %35 : vector<1x1x32xf32> to vector<1x32xf32>
    %37 = vector.broadcast %34 : vector<32x1xf32> to vector<32x32xf32>
    %38 = vector.broadcast %36 : vector<1x32xf32> to vector<32x32xf32>
    %39 = arith.mulf %37, %38 : vector<32x32xf32>
    %40 = arith.addf %33, %39 : vector<32x32xf32>
    %c2 = arith.constant 2 : index
    %c0_46 = arith.constant 0 : index
    %41 = tpu.strided_load %arg15[%c2, %c0_46] {strides = array<i32: 2, 1>} : memref<66x1xf32, #tpu.memory_space<vmem>>, vector<32x1xf32>
    %c2_47 = arith.constant 2 : index
    %c0_48 = arith.constant 0 : index
    %c0_49 = arith.constant 0 : index
    %42 = vector.load %arg2[%c2_47, %c0_48, %c0_49] : memref<4x1x32xf32, #tpu.memory_space<vmem>>, vector<1x1x32xf32>
    %43 = vector.shape_cast %42 : vector<1x1x32xf32> to vector<1x32xf32>
    %44 = vector.broadcast %41 : vector<32x1xf32> to vector<32x32xf32>
    %45 = vector.broadcast %43 : vector<1x32xf32> to vector<32x32xf32>
    %46 = arith.mulf %44, %45 : vector<32x32xf32>
    %47 = arith.addf %40, %46 : vector<32x32xf32>
    %c3 = arith.constant 3 : index
    %c0_50 = arith.constant 0 : index
    %48 = tpu.strided_load %arg15[%c3, %c0_50] {strides = array<i32: 2, 1>} : memref<66x1xf32, #tpu.memory_space<vmem>>, vector<32x1xf32>
    %c3_51 = arith.constant 3 : index
    %c0_52 = arith.constant 0 : index
    %c0_53 = arith.constant 0 : index
    %49 = vector.load %arg2[%c3_51, %c0_52, %c0_53] : memref<4x1x32xf32, #tpu.memory_space<vmem>>, vector<1x1x32xf32>
    %50 = vector.shape_cast %49 : vector<1x1x32xf32> to vector<1x32xf32>
    %51 = vector.broadcast %48 : vector<32x1xf32> to vector<32x32xf32>
    %52 = vector.broadcast %50 : vector<1x32xf32> to vector<32x32xf32>
    %53 = arith.mulf %51, %52 : vector<32x32xf32>
    %54 = arith.addf %47, %53 : vector<32x32xf32>
    %55 = vector.broadcast %27 : vector<1x32xf32> to vector<32x32xf32>
    %56 = arith.addf %54, %55 : vector<32x32xf32>
    %cst_54 = arith.constant 0.000000e+00 : f32
    %57 = vector.broadcast %cst_54 : f32 to vector<32x32xf32>
    %58 = arith.maximumf %56, %57 : vector<32x32xf32>
    %c1_55 = arith.constant 1 : index
    %c0_56 = arith.constant 0 : index
    %59 = vector.load %arg16[%c1_55, %c0_56] : memref<34x32xf32, #tpu.memory_space<vmem>>, vector<32x32xf32>
    tpu.vector_store %arg16[%c1_55, %c0_56], %58 {strides = array<i32>} : memref<34x32xf32, #tpu.memory_space<vmem>>, vector<32x32xf32>,
    %c0_57 = arith.constant 0 : index
    %c0_58 = arith.constant 0 : index
    %60 = vector.load %arg5[%c0_57, %c0_58] : memref<1x32xf32, #tpu.memory_space<vmem>>, vector<1x32xf32>
    %c0_59 = arith.constant 0 : index
    %c0_60 = arith.constant 0 : index
    %61 = tpu.strided_load %arg16[%c0_59, %c0_60] {strides = array<i32: 2, 1>} : memref<34x32xf32, #tpu.memory_space<vmem>>, vector<16x32xf32>
    %c0_61 = arith.constant 0 : index
    %c0_62 = arith.constant 0 : index
    %c0_63 = arith.constant 0 : index
    %62 = vector.load %arg4[%c0_61, %c0_62, %c0_63] : memref<4x32x32xbf16, #tpu.memory_space<vmem>>, vector<1x32x32xbf16>
    %63 = vector.shape_cast %62 : vector<1x32x32xbf16> to vector<32x32xbf16>
    %64 = arith.truncf %61 : vector<16x32xf32> to vector<16x32xbf16>
    %cst_64 = arith.constant dense<0.000000e+00> : vector<16x32xf32>
    %65 = tpu.matmul %64, %63, %cst_64 {dimension_numbers = #tpu.dot_dimension_numbers<[1], [0], [0], [1], [0, 0, 1, 1], [], []>} : vector<16x32xbf16>, vector<32x32xbf16>, vector<16x32xf32> -> vector<16x32xf32>
    %c1_65 = arith.constant 1 : index
    %c0_66 = arith.constant 0 : index
    %66 = tpu.strided_load %arg16[%c1_65, %c0_66] {strides = array<i32: 2, 1>} : memref<34x32xf32, #tpu.memory_space<vmem>>, vector<16x32xf32>
    %c1_67 = arith.constant 1 : index
    %c0_68 = arith.constant 0 : index
    %c0_69 = arith.constant 0 : index
    %67 = vector.load %arg4[%c1_67, %c0_68, %c0_69] : memref<4x32x32xbf16, #tpu.memory_space<vmem>>, vector<1x32x32xbf16>
    %68 = vector.shape_cast %67 : vector<1x32x32xbf16> to vector<32x32xbf16>
    %69 = arith.truncf %66 : vector<16x32xf32> to vector<16x32xbf16>
    %cst_70 = arith.constant dense<0.000000e+00> : vector<16x32xf32>
    %70 = tpu.matmul %69, %68, %cst_70 {dimension_numbers = #tpu.dot_dimension_numbers<[1], [0], [0], [1], [0, 0, 1, 1], [], []>} : vector<16x32xbf16>, vector<32x32xbf16>, vector<16x32xf32> -> vector<16x32xf32>
    %71 = arith.addf %65, %70 : vector<16x32xf32>
    %c2_71 = arith.constant 2 : index
    %c0_72 = arith.constant 0 : index
    %72 = tpu.strided_load %arg16[%c2_71, %c0_72] {strides = array<i32: 2, 1>} : memref<34x32xf32, #tpu.memory_space<vmem>>, vector<16x32xf32>
    %c2_73 = arith.constant 2 : index
    %c0_74 = arith.constant 0 : index
    %c0_75 = arith.constant 0 : index
    %73 = vector.load %arg4[%c2_73, %c0_74, %c0_75] : memref<4x32x32xbf16, #tpu.memory_space<vmem>>, vector<1x32x32xbf16>
    %74 = vector.shape_cast %73 : vector<1x32x32xbf16> to vector<32x32xbf16>
    %75 = arith.truncf %72 : vector<16x32xf32> to vector<16x32xbf16>
    %cst_76 = arith.constant dense<0.000000e+00> : vector<16x32xf32>
    %76 = tpu.matmul %75, %74, %cst_76 {dimension_numbers = #tpu.dot_dimension_numbers<[1], [0], [0], [1], [0, 0, 1, 1], [], []>} : vector<16x32xbf16>, vector<32x32xbf16>, vector<16x32xf32> -> vector<16x32xf32>
    %77 = arith.addf %71, %76 : vector<16x32xf32>
    %c3_77 = arith.constant 3 : index
    %c0_78 = arith.constant 0 : index
    %78 = tpu.strided_load %arg16[%c3_77, %c0_78] {strides = array<i32: 2, 1>} : memref<34x32xf32, #tpu.memory_space<vmem>>, vector<16x32xf32>
    %c3_79 = arith.constant 3 : index
    %c0_80 = arith.constant 0 : index
    %c0_81 = arith.constant 0 : index
    %79 = vector.load %arg4[%c3_79, %c0_80, %c0_81] : memref<4x32x32xbf16, #tpu.memory_space<vmem>>, vector<1x32x32xbf16>
    %80 = vector.shape_cast %79 : vector<1x32x32xbf16> to vector<32x32xbf16>
    %81 = arith.truncf %78 : vector<16x32xf32> to vector<16x32xbf16>
    %cst_82 = arith.constant dense<0.000000e+00> : vector<16x32xf32>
    %82 = tpu.matmul %81, %80, %cst_82 {dimension_numbers = #tpu.dot_dimension_numbers<[1], [0], [0], [1], [0, 0, 1, 1], [], []>} : vector<16x32xbf16>, vector<32x32xbf16>, vector<16x32xf32> -> vector<16x32xf32>
    %83 = arith.addf %77, %82 : vector<16x32xf32>
    %84 = vector.broadcast %60 : vector<1x32xf32> to vector<16x32xf32>
    %85 = arith.addf %83, %84 : vector<16x32xf32>
    %cst_83 = arith.constant 0.000000e+00 : f32
    %86 = vector.broadcast %cst_83 : f32 to vector<16x32xf32>
    %87 = arith.maximumf %85, %86 : vector<16x32xf32>
    %c1_84 = arith.constant 1 : index
    %c0_85 = arith.constant 0 : index
    %88 = vector.load %arg17[%c1_84, %c0_85] : memref<18x32xf32, #tpu.memory_space<vmem>>, vector<16x32xf32>
    tpu.vector_store %arg17[%c1_84, %c0_85], %87 {strides = array<i32>} : memref<18x32xf32, #tpu.memory_space<vmem>>, vector<16x32xf32>,
    %c0_86 = arith.constant 0 : index
    %c0_87 = arith.constant 0 : index
    %89 = vector.load %arg7[%c0_86, %c0_87] : memref<1x16xf32, #tpu.memory_space<vmem>>, vector<1x16xf32>
    %c0_88 = arith.constant 0 : index
    %c0_89 = arith.constant 0 : index
    %90 = tpu.strided_load %arg17[%c0_88, %c0_89] {strides = array<i32: 2, 1>} : memref<18x32xf32, #tpu.memory_space<vmem>>, vector<8x32xf32>
    %c0_90 = arith.constant 0 : index
    %c0_91 = arith.constant 0 : index
    %c0_92 = arith.constant 0 : index
    %91 = vector.load %arg6[%c0_90, %c0_91, %c0_92] : memref<4x32x16xbf16, #tpu.memory_space<vmem>>, vector<1x32x16xbf16>
    %92 = vector.shape_cast %91 : vector<1x32x16xbf16> to vector<32x16xbf16>
    %93 = arith.truncf %90 : vector<8x32xf32> to vector<8x32xbf16>
    %cst_93 = arith.constant dense<0.000000e+00> : vector<8x16xf32>
    %94 = tpu.matmul %93, %92, %cst_93 {dimension_numbers = #tpu.dot_dimension_numbers<[1], [0], [0], [1], [0, 0, 1, 1], [], []>} : vector<8x32xbf16>, vector<32x16xbf16>, vector<8x16xf32> -> vector<8x16xf32>
    %c1_94 = arith.constant 1 : index
    %c0_95 = arith.constant 0 : index
    %95 = tpu.strided_load %arg17[%c1_94, %c0_95] {strides = array<i32: 2, 1>} : memref<18x32xf32, #tpu.memory_space<vmem>>, vector<8x32xf32>
    %c1_96 = arith.constant 1 : index
    %c0_97 = arith.constant 0 : index
    %c0_98 = arith.constant 0 : index
    %96 = vector.load %arg6[%c1_96, %c0_97, %c0_98] : memref<4x32x16xbf16, #tpu.memory_space<vmem>>, vector<1x32x16xbf16>
    %97 = vector.shape_cast %96 : vector<1x32x16xbf16> to vector<32x16xbf16>
    %98 = arith.truncf %95 : vector<8x32xf32> to vector<8x32xbf16>
    %cst_99 = arith.constant dense<0.000000e+00> : vector<8x16xf32>
    %99 = tpu.matmul %98, %97, %cst_99 {dimension_numbers = #tpu.dot_dimension_numbers<[1], [0], [0], [1], [0, 0, 1, 1], [], []>} : vector<8x32xbf16>, vector<32x16xbf16>, vector<8x16xf32> -> vector<8x16xf32>
    %100 = arith.addf %94, %99 : vector<8x16xf32>
    %c2_100 = arith.constant 2 : index
    %c0_101 = arith.constant 0 : index
    %101 = tpu.strided_load %arg17[%c2_100, %c0_101] {strides = array<i32: 2, 1>} : memref<18x32xf32, #tpu.memory_space<vmem>>, vector<8x32xf32>
    %c2_102 = arith.constant 2 : index
    %c0_103 = arith.constant 0 : index
    %c0_104 = arith.constant 0 : index
    %102 = vector.load %arg6[%c2_102, %c0_103, %c0_104] : memref<4x32x16xbf16, #tpu.memory_space<vmem>>, vector<1x32x16xbf16>
    %103 = vector.shape_cast %102 : vector<1x32x16xbf16> to vector<32x16xbf16>
    %104 = arith.truncf %101 : vector<8x32xf32> to vector<8x32xbf16>
    %cst_105 = arith.constant dense<0.000000e+00> : vector<8x16xf32>
    %105 = tpu.matmul %104, %103, %cst_105 {dimension_numbers = #tpu.dot_dimension_numbers<[1], [0], [0], [1], [0, 0, 1, 1], [], []>} : vector<8x32xbf16>, vector<32x16xbf16>, vector<8x16xf32> -> vector<8x16xf32>
    %106 = arith.addf %100, %105 : vector<8x16xf32>
    %c3_106 = arith.constant 3 : index
    %c0_107 = arith.constant 0 : index
    %107 = tpu.strided_load %arg17[%c3_106, %c0_107] {strides = array<i32: 2, 1>} : memref<18x32xf32, #tpu.memory_space<vmem>>, vector<8x32xf32>
    %c3_108 = arith.constant 3 : index
    %c0_109 = arith.constant 0 : index
    %c0_110 = arith.constant 0 : index
    %108 = vector.load %arg6[%c3_108, %c0_109, %c0_110] : memref<4x32x16xbf16, #tpu.memory_space<vmem>>, vector<1x32x16xbf16>
    %109 = vector.shape_cast %108 : vector<1x32x16xbf16> to vector<32x16xbf16>
    %110 = arith.truncf %107 : vector<8x32xf32> to vector<8x32xbf16>
    %cst_111 = arith.constant dense<0.000000e+00> : vector<8x16xf32>
    %111 = tpu.matmul %110, %109, %cst_111 {dimension_numbers = #tpu.dot_dimension_numbers<[1], [0], [0], [1], [0, 0, 1, 1], [], []>} : vector<8x32xbf16>, vector<32x16xbf16>, vector<8x16xf32> -> vector<8x16xf32>
    %112 = arith.addf %106, %111 : vector<8x16xf32>
    %113 = vector.broadcast %89 : vector<1x16xf32> to vector<8x16xf32>
    %114 = arith.addf %112, %113 : vector<8x16xf32>
    %cst_112 = arith.constant 0.000000e+00 : f32
    %115 = vector.broadcast %cst_112 : f32 to vector<8x16xf32>
    %116 = arith.maximumf %114, %115 : vector<8x16xf32>
    %c1_113 = arith.constant 1 : index
    %c0_114 = arith.constant 0 : index
    %117 = vector.load %arg18[%c1_113, %c0_114] : memref<10x16xf32, #tpu.memory_space<vmem>>, vector<8x16xf32>
    tpu.vector_store %arg18[%c1_113, %c0_114], %116 {strides = array<i32>} : memref<10x16xf32, #tpu.memory_space<vmem>>, vector<8x16xf32>,
    %c0_115 = arith.constant 0 : index
    %c0_116 = arith.constant 0 : index
    %118 = vector.load %arg9[%c0_115, %c0_116] : memref<1x32xf32, #tpu.memory_space<vmem>>, vector<1x32xf32>
    %c1_117 = arith.constant 1 : index
    %c0_118 = arith.constant 0 : index
    %119 = vector.load %arg18[%c1_117, %c0_118] : memref<10x16xf32, #tpu.memory_space<vmem>>, vector<8x16xf32>
    %c1_119 = arith.constant 1 : index
    %c0_120 = arith.constant 0 : index
    %c0_121 = arith.constant 0 : index
    %120 = vector.load %arg8[%c1_119, %c0_120, %c0_121] : memref<4x16x32xbf16, #tpu.memory_space<vmem>>, vector<1x16x32xbf16>
    %121 = vector.shape_cast %120 : vector<1x16x32xbf16> to vector<16x32xbf16>
    %122 = arith.truncf %119 : vector<8x16xf32> to vector<8x16xbf16>
    %cst_122 = arith.constant dense<0.000000e+00> : vector<8x32xf32>
    %123 = tpu.matmul %122, %121, %cst_122 {dimension_numbers = #tpu.dot_dimension_numbers<[1], [0], [0], [1], [0, 0, 1, 1], [], []>} : vector<8x16xbf16>, vector<16x32xbf16>, vector<8x32xf32> -> vector<8x32xf32>
    %c0_123 = arith.constant 0 : index
    %c0_124 = arith.constant 0 : index
    %124 = vector.load %arg18[%c0_123, %c0_124] : memref<10x16xf32, #tpu.memory_space<vmem>>, vector<8x16xf32>
    %c3_125 = arith.constant 3 : index
    %c0_126 = arith.constant 0 : index
    %c0_127 = arith.constant 0 : index
    %125 = vector.load %arg8[%c3_125, %c0_126, %c0_127] : memref<4x16x32xbf16, #tpu.memory_space<vmem>>, vector<1x16x32xbf16>
    %126 = vector.shape_cast %125 : vector<1x16x32xbf16> to vector<16x32xbf16>
    %127 = arith.truncf %124 : vector<8x16xf32> to vector<8x16xbf16>
    %cst_128 = arith.constant dense<0.000000e+00> : vector<8x32xf32>
    %128 = tpu.matmul %127, %126, %cst_128 {dimension_numbers = #tpu.dot_dimension_numbers<[1], [0], [0], [1], [0, 0, 1, 1], [], []>} : vector<8x16xbf16>, vector<16x32xbf16>, vector<8x32xf32> -> vector<8x32xf32>
    %129 = arith.addf %123, %128 : vector<8x32xf32>
    %130 = vector.broadcast %118 : vector<1x32xf32> to vector<8x32xf32>
    %131 = arith.addf %129, %130 : vector<8x32xf32>
    %cst_129 = arith.constant 0.000000e+00 : f32
    %132 = vector.broadcast %cst_129 : f32 to vector<8x32xf32>
    %133 = arith.maximumf %131, %132 : vector<8x32xf32>
    %c1_130 = arith.constant 1 : index
    %c0_131 = arith.constant 0 : index
    %134 = tpu.strided_load %arg19[%c1_130, %c0_131] {strides = array<i32: 2, 1>} : memref<18x32xf32, #tpu.memory_space<vmem>>, vector<8x32xf32>
    tpu.strided_store %arg19[%c1_130, %c0_131], %133 {strides = array<i32: 2, 1>} : memref<18x32xf32, #tpu.memory_space<vmem>>, vector<8x32xf32>
    %c2_132 = arith.constant 2 : index
    %c0_133 = arith.constant 0 : index
    %135 = vector.load %arg18[%c2_132, %c0_133] : memref<10x16xf32, #tpu.memory_space<vmem>>, vector<8x16xf32>
    %c0_134 = arith.constant 0 : index
    %c0_135 = arith.constant 0 : index
    %c0_136 = arith.constant 0 : index
    %136 = vector.load %arg8[%c0_134, %c0_135, %c0_136] : memref<4x16x32xbf16, #tpu.memory_space<vmem>>, vector<1x16x32xbf16>
    %137 = vector.shape_cast %136 : vector<1x16x32xbf16> to vector<16x32xbf16>
    %138 = arith.truncf %135 : vector<8x16xf32> to vector<8x16xbf16>
    %cst_137 = arith.constant dense<0.000000e+00> : vector<8x32xf32>
    %139 = tpu.matmul %138, %137, %cst_137 {dimension_numbers = #tpu.dot_dimension_numbers<[1], [0], [0], [1], [0, 0, 1, 1], [], []>} : vector<8x16xbf16>, vector<16x32xbf16>, vector<8x32xf32> -> vector<8x32xf32>
    %c1_138 = arith.constant 1 : index
    %c0_139 = arith.constant 0 : index
    %140 = vector.load %arg18[%c1_138, %c0_139] : memref<10x16xf32, #tpu.memory_space<vmem>>, vector<8x16xf32>
    %c2_140 = arith.constant 2 : index
    %c0_141 = arith.constant 0 : index
    %c0_142 = arith.constant 0 : index
    %141 = vector.load %arg8[%c2_140, %c0_141, %c0_142] : memref<4x16x32xbf16, #tpu.memory_space<vmem>>, vector<1x16x32xbf16>
    %142 = vector.shape_cast %141 : vector<1x16x32xbf16> to vector<16x32xbf16>
    %143 = arith.truncf %140 : vector<8x16xf32> to vector<8x16xbf16>
    %cst_143 = arith.constant dense<0.000000e+00> : vector<8x32xf32>
    %144 = tpu.matmul %143, %142, %cst_143 {dimension_numbers = #tpu.dot_dimension_numbers<[1], [0], [0], [1], [0, 0, 1, 1], [], []>} : vector<8x16xbf16>, vector<16x32xbf16>, vector<8x32xf32> -> vector<8x32xf32>
    %145 = arith.addf %139, %144 : vector<8x32xf32>
    %146 = vector.broadcast %118 : vector<1x32xf32> to vector<8x32xf32>
    %147 = arith.addf %145, %146 : vector<8x32xf32>
    %cst_144 = arith.constant 0.000000e+00 : f32
    %148 = vector.broadcast %cst_144 : f32 to vector<8x32xf32>
    %149 = arith.maximumf %147, %148 : vector<8x32xf32>
    %c2_145 = arith.constant 2 : index
    %c0_146 = arith.constant 0 : index
    %150 = tpu.strided_load %arg19[%c2_145, %c0_146] {strides = array<i32: 2, 1>} : memref<18x32xf32, #tpu.memory_space<vmem>>, vector<8x32xf32>
    tpu.strided_store %arg19[%c2_145, %c0_146], %149 {strides = array<i32: 2, 1>} : memref<18x32xf32, #tpu.memory_space<vmem>>, vector<8x32xf32>
    %c0_147 = arith.constant 0 : index
    %c0_148 = arith.constant 0 : index
    %151 = vector.load %arg11[%c0_147, %c0_148] : memref<1x32xf32, #tpu.memory_space<vmem>>, vector<1x32xf32>
    %c1_149 = arith.constant 1 : index
    %c0_150 = arith.constant 0 : index
    %152 = vector.load %arg19[%c1_149, %c0_150] : memref<18x32xf32, #tpu.memory_space<vmem>>, vector<16x32xf32>
    %c1_151 = arith.constant 1 : index
    %c0_152 = arith.constant 0 : index
    %c0_153 = arith.constant 0 : index
    %153 = vector.load %arg10[%c1_151, %c0_152, %c0_153] : memref<4x32x32xbf16, #tpu.memory_space<vmem>>, vector<1x32x32xbf16>
    %154 = vector.shape_cast %153 : vector<1x32x32xbf16> to vector<32x32xbf16>
    %155 = arith.truncf %152 : vector<16x32xf32> to vector<16x32xbf16>
    %cst_154 = arith.constant dense<0.000000e+00> : vector<16x32xf32>
    %156 = tpu.matmul %155, %154, %cst_154 {dimension_numbers = #tpu.dot_dimension_numbers<[1], [0], [0], [1], [0, 0, 1, 1], [], []>} : vector<16x32xbf16>, vector<32x32xbf16>, vector<16x32xf32> -> vector<16x32xf32>
    %c0_155 = arith.constant 0 : index
    %c0_156 = arith.constant 0 : index
    %157 = vector.load %arg19[%c0_155, %c0_156] : memref<18x32xf32, #tpu.memory_space<vmem>>, vector<16x32xf32>
    %c3_157 = arith.constant 3 : index
    %c0_158 = arith.constant 0 : index
    %c0_159 = arith.constant 0 : index
    %158 = vector.load %arg10[%c3_157, %c0_158, %c0_159] : memref<4x32x32xbf16, #tpu.memory_space<vmem>>, vector<1x32x32xbf16>
    %159 = vector.shape_cast %158 : vector<1x32x32xbf16> to vector<32x32xbf16>
    %160 = arith.truncf %157 : vector<16x32xf32> to vector<16x32xbf16>
    %cst_160 = arith.constant dense<0.000000e+00> : vector<16x32xf32>
    %161 = tpu.matmul %160, %159, %cst_160 {dimension_numbers = #tpu.dot_dimension_numbers<[1], [0], [0], [1], [0, 0, 1, 1], [], []>} : vector<16x32xbf16>, vector<32x32xbf16>, vector<16x32xf32> -> vector<16x32xf32>
    %162 = arith.addf %156, %161 : vector<16x32xf32>
    %163 = vector.broadcast %151 : vector<1x32xf32> to vector<16x32xf32>
    %164 = arith.addf %162, %163 : vector<16x32xf32>
    %cst_161 = arith.constant 0.000000e+00 : f32
    %165 = vector.broadcast %cst_161 : f32 to vector<16x32xf32>
    %166 = arith.maximumf %164, %165 : vector<16x32xf32>
    %c1_162 = arith.constant 1 : index
    %c0_163 = arith.constant 0 : index
    %167 = tpu.strided_load %arg20[%c1_162, %c0_163] {strides = array<i32: 2, 1>} : memref<34x32xf32, #tpu.memory_space<vmem>>, vector<16x32xf32>
    tpu.strided_store %arg20[%c1_162, %c0_163], %166 {strides = array<i32: 2, 1>} : memref<34x32xf32, #tpu.memory_space<vmem>>, vector<16x32xf32>
    %c2_164 = arith.constant 2 : index
    %c0_165 = arith.constant 0 : index
    %168 = vector.load %arg19[%c2_164, %c0_165] : memref<18x32xf32, #tpu.memory_space<vmem>>, vector<16x32xf32>
    %c0_166 = arith.constant 0 : index
    %c0_167 = arith.constant 0 : index
    %c0_168 = arith.constant 0 : index
    %169 = vector.load %arg10[%c0_166, %c0_167, %c0_168] : memref<4x32x32xbf16, #tpu.memory_space<vmem>>, vector<1x32x32xbf16>
    %170 = vector.shape_cast %169 : vector<1x32x32xbf16> to vector<32x32xbf16>
    %171 = arith.truncf %168 : vector<16x32xf32> to vector<16x32xbf16>
    %cst_169 = arith.constant dense<0.000000e+00> : vector<16x32xf32>
    %172 = tpu.matmul %171, %170, %cst_169 {dimension_numbers = #tpu.dot_dimension_numbers<[1], [0], [0], [1], [0, 0, 1, 1], [], []>} : vector<16x32xbf16>, vector<32x32xbf16>, vector<16x32xf32> -> vector<16x32xf32>
    %c1_170 = arith.constant 1 : index
    %c0_171 = arith.constant 0 : index
    %173 = vector.load %arg19[%c1_170, %c0_171] : memref<18x32xf32, #tpu.memory_space<vmem>>, vector<16x32xf32>
    %c2_172 = arith.constant 2 : index
    %c0_173 = arith.constant 0 : index
    %c0_174 = arith.constant 0 : index
    %174 = vector.load %arg10[%c2_172, %c0_173, %c0_174] : memref<4x32x32xbf16, #tpu.memory_space<vmem>>, vector<1x32x32xbf16>
    %175 = vector.shape_cast %174 : vector<1x32x32xbf16> to vector<32x32xbf16>
    %176 = arith.truncf %173 : vector<16x32xf32> to vector<16x32xbf16>
    %cst_175 = arith.constant dense<0.000000e+00> : vector<16x32xf32>
    %177 = tpu.matmul %176, %175, %cst_175 {dimension_numbers = #tpu.dot_dimension_numbers<[1], [0], [0], [1], [0, 0, 1, 1], [], []>} : vector<16x32xbf16>, vector<32x32xbf16>, vector<16x32xf32> -> vector<16x32xf32>
    %178 = arith.addf %172, %177 : vector<16x32xf32>
    %179 = vector.broadcast %151 : vector<1x32xf32> to vector<16x32xf32>
    %180 = arith.addf %178, %179 : vector<16x32xf32>
    %cst_176 = arith.constant 0.000000e+00 : f32
    %181 = vector.broadcast %cst_176 : f32 to vector<16x32xf32>
    %182 = arith.maximumf %180, %181 : vector<16x32xf32>
    %c2_177 = arith.constant 2 : index
    %c0_178 = arith.constant 0 : index
    %183 = tpu.strided_load %arg20[%c2_177, %c0_178] {strides = array<i32: 2, 1>} : memref<34x32xf32, #tpu.memory_space<vmem>>, vector<16x32xf32>
    tpu.strided_store %arg20[%c2_177, %c0_178], %182 {strides = array<i32: 2, 1>} : memref<34x32xf32, #tpu.memory_space<vmem>>, vector<16x32xf32>
    %c0_179 = arith.constant 0 : index
    %c0_180 = arith.constant 0 : index
    %184 = vector.load %arg13[%c0_179, %c0_180] : memref<1x1xf32, #tpu.memory_space<vmem>>, vector<1x1xf32>
    %c1_181 = arith.constant 1 : index
    %c0_182 = arith.constant 0 : index
    %185 = vector.load %arg20[%c1_181, %c0_182] : memref<34x32xf32, #tpu.memory_space<vmem>>, vector<32x32xf32>
    %c1_183 = arith.constant 1 : index
    %c0_184 = arith.constant 0 : index
    %c0_185 = arith.constant 0 : index
    %186 = vector.load %arg12[%c1_183, %c0_184, %c0_185] : memref<4x32x1xbf16, #tpu.memory_space<vmem>>, vector<1x32x1xbf16>
    %187 = vector.shape_cast %186 : vector<1x32x1xbf16> to vector<32x1xbf16>
    %188 = arith.truncf %185 : vector<32x32xf32> to vector<32x32xbf16>
    %cst_186 = arith.constant dense<0.000000e+00> : vector<32x1xf32>
    %189 = tpu.matmul %188, %187, %cst_186 {dimension_numbers = #tpu.dot_dimension_numbers<[1], [0], [0], [1], [0, 0, 1, 1], [], []>} : vector<32x32xbf16>, vector<32x1xbf16>, vector<32x1xf32> -> vector<32x1xf32>
    %c0_187 = arith.constant 0 : index
    %c0_188 = arith.constant 0 : index
    %190 = vector.load %arg20[%c0_187, %c0_188] : memref<34x32xf32, #tpu.memory_space<vmem>>, vector<32x32xf32>
    %c3_189 = arith.constant 3 : index
    %c0_190 = arith.constant 0 : index
    %c0_191 = arith.constant 0 : index
    %191 = vector.load %arg12[%c3_189, %c0_190, %c0_191] : memref<4x32x1xbf16, #tpu.memory_space<vmem>>, vector<1x32x1xbf16>
    %192 = vector.shape_cast %191 : vector<1x32x1xbf16> to vector<32x1xbf16>
    %193 = arith.truncf %190 : vector<32x32xf32> to vector<32x32xbf16>
    %cst_192 = arith.constant dense<0.000000e+00> : vector<32x1xf32>
    %194 = tpu.matmul %193, %192, %cst_192 {dimension_numbers = #tpu.dot_dimension_numbers<[1], [0], [0], [1], [0, 0, 1, 1], [], []>} : vector<32x32xbf16>, vector<32x1xbf16>, vector<32x1xf32> -> vector<32x1xf32>
    %195 = arith.addf %189, %194 : vector<32x1xf32>
    %196 = vector.broadcast %184 : vector<1x1xf32> to vector<32x1xf32>
    %197 = arith.addf %195, %196 : vector<32x1xf32>
    %198 = math.tanh %197 : vector<32x1xf32>
    %c0_193 = arith.constant 0 : index
    %c0_194 = arith.constant 0 : index
    %199 = tpu.strided_load %arg21[%c0_193, %c0_194] {strides = array<i32: 2, 1>} : memref<64x1xf32, #tpu.memory_space<vmem>>, vector<32x1xf32>
    tpu.strided_store %arg21[%c0_193, %c0_194], %198 {strides = array<i32: 2, 1>} : memref<64x1xf32, #tpu.memory_space<vmem>>, vector<32x1xf32>
    %c2_195 = arith.constant 2 : index
    %c0_196 = arith.constant 0 : index
    %200 = vector.load %arg20[%c2_195, %c0_196] : memref<34x32xf32, #tpu.memory_space<vmem>>, vector<32x32xf32>
    %c0_197 = arith.constant 0 : index
    %c0_198 = arith.constant 0 : index
    %c0_199 = arith.constant 0 : index
    %201 = vector.load %arg12[%c0_197, %c0_198, %c0_199] : memref<4x32x1xbf16, #tpu.memory_space<vmem>>, vector<1x32x1xbf16>
    %202 = vector.shape_cast %201 : vector<1x32x1xbf16> to vector<32x1xbf16>
    %203 = arith.truncf %200 : vector<32x32xf32> to vector<32x32xbf16>
    %cst_200 = arith.constant dense<0.000000e+00> : vector<32x1xf32>
    %204 = tpu.matmul %203, %202, %cst_200 {dimension_numbers = #tpu.dot_dimension_numbers<[1], [0], [0], [1], [0, 0, 1, 1], [], []>} : vector<32x32xbf16>, vector<32x1xbf16>, vector<32x1xf32> -> vector<32x1xf32>
    %c1_201 = arith.constant 1 : index
    %c0_202 = arith.constant 0 : index
    %205 = vector.load %arg20[%c1_201, %c0_202] : memref<34x32xf32, #tpu.memory_space<vmem>>, vector<32x32xf32>
    %c2_203 = arith.constant 2 : index
    %c0_204 = arith.constant 0 : index
    %c0_205 = arith.constant 0 : index
    %206 = vector.load %arg12[%c2_203, %c0_204, %c0_205] : memref<4x32x1xbf16, #tpu.memory_space<vmem>>, vector<1x32x1xbf16>
    %207 = vector.shape_cast %206 : vector<1x32x1xbf16> to vector<32x1xbf16>
    %208 = arith.truncf %205 : vector<32x32xf32> to vector<32x32xbf16>
    %cst_206 = arith.constant dense<0.000000e+00> : vector<32x1xf32>
    %209 = tpu.matmul %208, %207, %cst_206 {dimension_numbers = #tpu.dot_dimension_numbers<[1], [0], [0], [1], [0, 0, 1, 1], [], []>} : vector<32x32xbf16>, vector<32x1xbf16>, vector<32x1xf32> -> vector<32x1xf32>
    %210 = arith.addf %204, %209 : vector<32x1xf32>
    %211 = vector.broadcast %184 : vector<1x1xf32> to vector<32x1xf32>
    %212 = arith.addf %210, %211 : vector<32x1xf32>
    %213 = math.tanh %212 : vector<32x1xf32>
    %c1_207 = arith.constant 1 : index
    %c0_208 = arith.constant 0 : index
    %214 = tpu.strided_load %arg21[%c1_207, %c0_208] {strides = array<i32: 2, 1>} : memref<64x1xf32, #tpu.memory_space<vmem>>, vector<32x1xf32>
    tpu.strided_store %arg21[%c1_207, %c0_208], %213 {strides = array<i32: 2, 1>} : memref<64x1xf32, #tpu.memory_space<vmem>>, vector<32x1xf32>
    %c0_209 = arith.constant 0 : index
    %c0_210 = arith.constant 0 : index
    %215 = vector.load %arg21[%c0_209, %c0_210] : memref<64x1xf32, #tpu.memory_space<vmem>>, vector<64x1xf32>
    %216 = tpu.transpose %215, [1, 0] : vector<64x1xf32> -> vector<1x64xf32>
    %c0_211 = arith.constant 0 : index
    %c0_212 = arith.constant 0 : index
    %c0_213 = arith.constant 0 : index
    %217 = vector.load %arg14[%c0_211, %c0_212, %c0_213] : memref<1x1x64xf32, #tpu.memory_space<vmem>>, vector<1x1x64xf32>
    %218 = vector.shape_cast %217 : vector<1x1x64xf32> to vector<1x64xf32>
    %219 = vector.shape_cast %216 : vector<1x64xf32> to vector<1x1x64xf32>
    tpu.vector_store %arg14[%c0_211, %c0_212, %c0_213], %219 {strides = array<i32>} : memref<1x1x64xf32, #tpu.memory_space<vmem>>, vector<1x1x64xf32>,
    return
  }
  func.func @transform_0(%arg0: i32) -> (i32, i32, i32) {
    %c0_i32 = arith.constant 0 : i32
    %c0_i32_0 = arith.constant 0 : i32
    %c0_i32_1 = arith.constant 0 : i32
    return %arg0, %c0_i32, %c0_i32_0 : i32, i32, i32
  }
  func.func @transform_1(%arg0: i32) -> (i32, i32, i32) {
    %c0_i32 = arith.constant 0 : i32
    %c0_i32_0 = arith.constant 0 : i32
    %c0_i32_1 = arith.constant 0 : i32
    %c0_i32_2 = arith.constant 0 : i32
    return %c0_i32, %c0_i32_0, %c0_i32_1 : i32, i32, i32
  }
  func.func @transform_2(%arg0: i32) -> (i32, i32) {
    %c0_i32 = arith.constant 0 : i32
    %c0_i32_0 = arith.constant 0 : i32
    %c0_i32_1 = arith.constant 0 : i32
    return %c0_i32, %c0_i32_0 : i32, i32
  }
  func.func @transform_3(%arg0: i32) -> (i32, i32, i32) {
    %c0_i32 = arith.constant 0 : i32
    %c0_i32_0 = arith.constant 0 : i32
    %c0_i32_1 = arith.constant 0 : i32
    %c0_i32_2 = arith.constant 0 : i32
    return %c0_i32, %c0_i32_0, %c0_i32_1 : i32, i32, i32
  }
  func.func @transform_4(%arg0: i32) -> (i32, i32) {
    %c0_i32 = arith.constant 0 : i32
    %c0_i32_0 = arith.constant 0 : i32
    %c0_i32_1 = arith.constant 0 : i32
    return %c0_i32, %c0_i32_0 : i32, i32
  }
  func.func @transform_5(%arg0: i32) -> (i32, i32, i32) {
    %c0_i32 = arith.constant 0 : i32
    %c0_i32_0 = arith.constant 0 : i32
    %c0_i32_1 = arith.constant 0 : i32
    %c0_i32_2 = arith.constant 0 : i32
    return %c0_i32, %c0_i32_0, %c0_i32_1 : i32, i32, i32
  }
  func.func @transform_6(%arg0: i32) -> (i32, i32) {
    %c0_i32 = arith.constant 0 : i32
    %c0_i32_0 = arith.constant 0 : i32
    %c0_i32_1 = arith.constant 0 : i32
    return %c0_i32, %c0_i32_0 : i32, i32
  }
  func.func @transform_7(%arg0: i32) -> (i32, i32, i32) {
    %c0_i32 = arith.constant 0 : i32
    %c0_i32_0 = arith.constant 0 : i32
    %c0_i32_1 = arith.constant 0 : i32
    %c0_i32_2 = arith.constant 0 : i32
    return %c0_i32, %c0_i32_0, %c0_i32_1 : i32, i32, i32
  }
  func.func @transform_8(%arg0: i32) -> (i32, i32) {
    %c0_i32 = arith.constant 0 : i32
    %c0_i32_0 = arith.constant 0 : i32
    %c0_i32_1 = arith.constant 0 : i32
    return %c0_i32, %c0_i32_0 : i32, i32
  }
  func.func @transform_9(%arg0: i32) -> (i32, i32, i32) {
    %c0_i32 = arith.constant 0 : i32
    %c0_i32_0 = arith.constant 0 : i32
    %c0_i32_1 = arith.constant 0 : i32
    %c0_i32_2 = arith.constant 0 : i32
    return %c0_i32, %c0_i32_0, %c0_i32_1 : i32, i32, i32
  }
  func.func @transform_10(%arg0: i32) -> (i32, i32) {
    %c0_i32 = arith.constant 0 : i32
    %c0_i32_0 = arith.constant 0 : i32
    %c0_i32_1 = arith.constant 0 : i32
    return %c0_i32, %c0_i32_0 : i32, i32
  }
  func.func @transform_11(%arg0: i32) -> (i32, i32, i32) {
    %c0_i32 = arith.constant 0 : i32
    %c0_i32_0 = arith.constant 0 : i32
    %c0_i32_1 = arith.constant 0 : i32
    %c0_i32_2 = arith.constant 0 : i32
    return %c0_i32, %c0_i32_0, %c0_i32_1 : i32, i32, i32
  }
  func.func @transform_12(%arg0: i32) -> (i32, i32) {
    %c0_i32 = arith.constant 0 : i32
    %c0_i32_0 = arith.constant 0 : i32
    %c0_i32_1 = arith.constant 0 : i32
    return %c0_i32, %c0_i32_0 : i32, i32
  }
  func.func @transform_13(%arg0: i32) -> (i32, i32, i32) {
    %c0_i32 = arith.constant 0 : i32
    %c0_i32_0 = arith.constant 0 : i32
    %c0_i32_1 = arith.constant 0 : i32
    return %arg0, %c0_i32, %c0_i32_0 : i32, i32, i32
  }
}

</mosaic_0001>

<bundles_post_ra>
// kernel: forward.1
= control target key start
LH: loop header
LB: loop body
LE: loop exit
PB: predicated region body
PF: predicated region fallthrough
CT: control target
= control target key end

     0   :  { %s2341_s0 = inlined_call_operand.vmem [shape: f32[2,64,1], index: 0, kind: input, shape index: {}]   ;;  %s2342_s1 = inlined_call_operand.vmem [shape: f32[4,1,32], index: 1, kind: input, shape index: {}]   ;;  %s2343_s2 = inlined_call_operand.vmem [shape: f32[1,32], index: 2, kind: input, shape index: {}]   ;;  %s2344_s3 = inlined_call_operand.vmem [shape: bf16[4,32,32], index: 3, kind: input, shape index: {}]   ;;  %s2345_s4 = inlined_call_operand.vmem [shape: f32[1,32], index: 4, kind: input, shape index: {}]   ;;  %s2346_s5 = inlined_call_operand.vmem [shape: bf16[4,32,16], index: 5, kind: input, shape index: {}]   ;;  %s2347_s6 = inlined_call_operand.vmem [shape: f32[1,16], index: 6, kind: input, shape index: {}]   ;;  %s2348_s7 = inlined_call_operand.vmem [shape: bf16[4,16,32], index: 7, kind: input, shape index: {}]   ;;  %s2349_s8 = inlined_call_operand.vmem [shape: f32[1,32], index: 8, kind: input, shape index: {}]   ;;  %s2350_s9 = inlined_call_operand.vmem [shape: bf16[4,32,32], index: 9, kind: input, shape index: {}]   ;;  %s2351_s10 = inlined_call_operand.vmem [shape: f32[1,32], index: 10, kind: input, shape index: {}]   ;;  %s2352_s11 = inlined_call_operand.vmem [shape: bf16[4,32,1], index: 11, kind: input, shape index: {}]   ;;  %s2353_s12 = inlined_call_operand.<no memory space> [shape: f32[1,1], index: 12, kind: input, shape index: {}]   ;;  %s2354_s13 = inlined_call_operand.hbm [shape: f32[2,1,64], index: 13, kind: output, shape index: {}]  }
   0x1   :  { %2355 = sst [smem:[#allocation13_spill]] %s2341_s0  ;;  %v18_v0 = vstv %s2353_s12 }
   0x2   :  { %2356 = sst [smem:[#allocation14_spill]] %s2342_s1  ;;  %19 = vst [vmem:[#allocation9] sm:$0x1] %v18_v0 }
   0x3   :  { %2357 = sst [smem:[#allocation15_spill]] %s2343_s2 }
   0x4   :  { %20 = vsyncpa [#allocation11], 0 }
   0x5   :  { %22 = vsyncpa [#allocation11 + $0x1], 0  ;;  %s2069_s27 = smov 0   ;;  %s2071_s28 = smov 0  }
   0x6   :  { %s2073_s29 = smov 0   ;;  %s2075_s30 = smov 0  }
   0x7 LB: > { %s2090_s12 = sadd.s32 4294967295, %s1992_s30   ;;  %s1590_s14 = sadd.s32 4294967294, %s1992_s30   ;;  %s1992_s30 = sphi %s2075_s30, %s2366_s30   ;;  %s1988_s29 = sphi %s2073_s29, %s2365_s29   ;;  %s1984_s28 = sphi %s2071_s28, %s2364_s28   ;;  %s1980_s27 = sphi %s2069_s27, %s2363_s27  }
   0x8   : > { %s2094_s15 = sadd.s32 1, %s1992_s30   ;;  %s313_s16 = sadd.s32 1, %s1988_s29 }
   0x9   : > { %s310_s17 = ssub.s32 %s1992_s30, %s2094_s15  ;;  %p323_p0 = scmp.ne.s32.totalorder %s1988_s29, %s1984_s28 }
   0xa   : > { %p311_p1 = scmp.eq.s32.totalorder %s310_s17, 0  ;;  %p324_p2 = scmp.eq.s32.totalorder %s2090_s12, 1 }
   0xb   : > { %p329_p3 = scmp.ne.s32.totalorder %s1984_s28, %s1980_s27  ;;  %p330_p4 = scmp.eq.s32.totalorder %s1590_s14, 1 }
   0xc   : > { %s2105_s18 = scalar_select %p311_p1, %s1988_s29, %s313_s16  }
   0xd   : > { %p2107_p5 = por %p324_p2, %p323_p0  ;;  %p2111_p6 = por %p330_p4, %p329_p3 }
   0xe   : > { %p1593_p7 = scmp.ge.s32.totalorder %s1992_s30, 1  ;;  %p392_p8 = scmp.lt.s32.totalorder %s1992_s30, 3 }
  0x10   : > { %p393_p9 = pnand %p1593_p7, %p392_p8 }
  0x11   : > { %p435_p10 = scmp.lt.s32.totalorder (!%p393_p9), %s2090_s12, 1  ;;  %s2360_s0 = sld [smem:[#allocation13_spill]] (!%p393_p9) }
  0x12   : > { %396 = sbr.rel (%p393_p9) target bundleno = 1144 (0x478), region = 72  ;;  %s2361_s1 = sld [smem:[#allocation14_spill]] (!%p393_p9) }
  0x13   : > { %s2362_s2 = sld [smem:[#allocation15_spill]] (!%p393_p9)  ;;  %s433_s26 = sand.u32 (!%p393_p9), 1, %s1984_s28  }
  0x14   : > { %s1531_s17 = scalar_lea.hbm (!%p393_p9), %s2354_s13, %s2090_s12 }
  0x15   : > { %s1535_s23 = sshll.u32 (!%p393_p9), %s1531_s17, 4  ;;  %s1536_s23 = int_to_ptr.hbm [resolvable:$true] %s1535_s23 }
  0x16   : > { %s1944_s24 = sshra.s32 (!%p393_p9), %s1536_s23, 4  ;;  %s1945_s24 = int_to_ptr.hbm [resolvable:$true] %s1944_s24 }
  0x17   : > { %vm441_vm0 = vcmask 0   ;;  %v1994_v1 = vmov 0   ;;  %v1995_v2 = vmov 0.0   ;;  %s436_s21 = scalar_select %p435_p10, %s2090_s12, 1  ;;  %vm464_vm1 = vcmask 7168   ;;  %v1827_v38 = vld [vmem:[%s2344_s3 + $0x18] sm:$0xff] }
  0x18   : > { %1903 = vset.pattern.permute.xlu2 %v1994_v1  ;;  %1902 = vset.pattern.permute.xlu1 %v1994_v1  ;;  %442 = vst.msk [vmem:[#allocation2] sm:$0x1] %vm441_vm0, %v1995_v2  ;;  %vm444_vm2 = vcmask 253952   ;;  %v1904_v36 = vld [vmem:[%s2361_s1 + $0x1] ss:$0 sm:$0xff]  ;;  %v1825_v39 = vld [vmem:[%s2344_s3 + $0x8] sm:$0xff]  ;;  %p1951_p0 = scmp.lt.s32.totalorder %s1945_s24, %s2354_s13 }
  0x19   : > { %1901 = vset.pattern.permute.xlu0 %v1994_v1  ;;  %443 = vst.msk [vmem:[#allocation2 + $0x41] sm:$0x1] %vm441_vm0, %v1995_v2  ;;  %s1823_s22 = sshll.u32 %s436_s21, 6  ;;  %v1829_v40 = vld [vmem:[%s2344_s3 + $0x28] sm:$0xff]  ;;  %v1831_v41 = vld [vmem:[%s2344_s3 + $0x38] sm:$0xff]  ;;  %688 = vmatpush.bf16.msra.mxu0 %v1827_v38  ;;  %v1826_v44 = vld [vmem:[%s2344_s3 + $0x10] sm:$0xff] }
  0x1a   : > { %s439_s25 = scalar_lea.vmem %s2360_s0, %s1823_s22  ;;  %445 = vst.msk [vmem:[#allocation3] sm:$0x1] %vm444_vm2, %v1995_v2  ;;  %v1906_v42 = vld [vmem:[%s2361_s1] ss:$0 sm:$0xff]  ;;  %717 = vmatpush.bf16.msra.mxu1 %v1825_v39  ;;  %756 = vmatpush.bf16.msra.mxu2 %v1829_v40  ;;  %v1830_v47 = vld [vmem:[%s2344_s3 + $0x30] sm:$0xff]  ;;  %vm643_vm3 = vcmask 261120  }
  0x1b   : > { %v459_v3 = vld [vmem:[%s439_s25 + $0x18] sm:$0xff]  ;;  %v460_v4 = vld [vmem:[%s439_s25 + $0x20] sm:$0xff]  ;;  %v461_v5 = vld [vmem:[%s439_s25 + $0x28] sm:$0xff]  ;;  %446 = vst.msk [vmem:[#allocation3 + $0x21] sm:$0x1] %vm444_vm2, %v1995_v2  ;;  %797 = vmatpush.bf16.msra.mxu3 %v1831_v41  ;;  %vm449_vm4 = vcmask 122880  }
  0x1c   : > { %468 = vst.msk [vmem:[#allocation2 + $0x19] sm:$0xff] %vm464_vm1, %v459_v3  ;;  %v456_v6 = vld [vmem:[%s439_s25] sm:$0xff]  ;;  %v457_v7 = vld [vmem:[%s439_s25 + $0x8] sm:$0xff]  ;;  %v462_v8 = vld [vmem:[%s439_s25 + $0x30] sm:$0xff]  ;;  %vm966_vm5 = vcmask 130048   ;;  %s434_s21 = scalar_lea.vmem [#allocation10], %s433_s26 }
  0x1d   : > { %469 = vst.msk [vmem:[#allocation2 + $0x21] sm:$0xff] %vm464_vm1, %v460_v4  ;;  %v463_v9 = vld [vmem:[%s439_s25 + $0x38] sm:$0xff]  ;;  %v458_v10 = vld [vmem:[%s439_s25 + $0x10] sm:$0xff]  ;;  %v1824_v45 = vld [vmem:[%s2344_s3] sm:$0xff]  ;;  %689 = vmatpush.bf16.msra.mxu0 %v1826_v44  ;;  %s1533_s22 = sshll.u32 %s434_s21, 4  ;;  %vm1520_vm6 = vcmask 516096   ;;  %s1534_s22 = int_to_ptr.vmem [resolvable:$true] %s1533_s22 }
  0x1e   : > { %470 = vst.msk [vmem:[#allocation2 + $0x29] sm:$0xff] %vm464_vm1, %v461_v5  ;;  %v1828_v46 = vld [vmem:[%s2344_s3 + $0x20] sm:$0xff]  ;;  %718 = vmatpush.bf16.msra.mxu1 %v1824_v45  ;;  %v1837_v41 = vld [vmem:[%s2346_s5 + $0x28] sm:$0xff]  ;;  %s1523_s0 = scalar_lea.sflag [#allocation11], %s433_s26  ;;  %s1946_s25 = scalar_lea.hbm %s1945_s24, 1 }
  0x1f   : > { %465 = vst.msk [vmem:[#allocation2 + $0x1] sm:$0xff] %vm464_vm1, %v456_v6  ;;  %v1905_v48 = vld [vmem:[%s2361_s1 + $0x2] ss:$0 sm:$0xff]  ;;  %v1907_v50 = vld [vmem:[%s2361_s1 + $0x3] ss:$0 sm:$0xff]  ;;  %757 = vmatpush.bf16.msra.mxu2 %v1828_v46  ;;  %798 = vmatpush.bf16.msra.mxu3 %v1830_v47  ;;  %v1833_v44 = vld [vmem:[%s2346_s5 + $0x8] sm:$0xff]  ;;  %p1947_p11 = scmp.ne.s32.totalorder %s1945_s24, %s1946_s25 }
  0x20   : > { %466 = vst.msk [vmem:[#allocation2 + $0x9] sm:$0xff] %vm464_vm1, %v457_v7  ;;  %v1908_v61 = vld [vmem:[%s2362_s2] ss:$0 sm:$0xff]  ;;  %v1838_v46 = vld [vmem:[%s2346_s5 + $0x30] sm:$0xff]  ;;  %s1950_s12 = scalar_lea.hbm %s2354_s13, 2 }
  0x21   : > { %471 = vst.msk [vmem:[#allocation2 + $0x31] sm:$0xff] %vm464_vm1, %v462_v8  ;;  %v1836_v45 = vld [vmem:[%s2346_s5 + $0x20] sm:$0xff]  ;;  %v1834_v47 = vld [vmem:[%s2346_s5 + $0x10] sm:$0xff]  ;;  %p1948_p12 = pnand %p1947_p11, %p2107_p5  ;;  %p1952_p1 = scmp.lt.s32.totalorder %s1950_s12, %s1946_s25 }
  0x22   : > { %472 = vst.msk [vmem:[#allocation2 + $0x39] sm:$0xff] %vm464_vm1, %v463_v9  ;;  %880 = vmatpush.bf16.msrb.mxu1 %v1833_v44  ;;  %v1911_v44 = vld [vmem:[%s2349_s8] ss:$0 sm:$0xff] }
  0x23   : > { %467 = vst.msk [vmem:[#allocation2 + $0x11] sm:$0xff] %vm464_vm1, %v458_v10  ;;  %916 = vmatpush.bf16.msrb.mxu2 %v1837_v41  ;;  %v1844_v41 = vld [vmem:[%s2350_s9 + $0x10] sm:$0xff]  ;;  %p1949_p13 = pneg %p1948_p12  ;;  %p1953_p2 = por %p1952_p1, %p1951_p0 }
  0x24   : > { %447 = vst.msk [vmem:[#allocation4] sm:$0x1] %vm444_vm2, %v1995_v2 }
  0x25   : > { %v478_v11 = vld [vmem:[#allocation2 + $0x20] ss:$2 sm:$0xff]  ;;  %v514_v19 = vld [vmem:[#allocation2 + $0x21] ss:$2 sm:$0xff]  ;;  %448 = vst.msk [vmem:[#allocation4 + $0x11] sm:$0x1] %vm444_vm2, %v1995_v2  ;;  %p1954_p3 = pnand %p1953_p2, %p1949_p13 }
  0x26   : > { %494 = vperm.xlu1 %1902, %v478_v11   ;;  %v555_v20 = vld [vmem:[#allocation2 + $0x22] ss:$2 sm:$0xff]  ;;  %452 = vst.msk [vmem:[#allocation6] sm:$0x1] %vm444_vm2, %v1995_v2 }
  0x27   : > { %v510_v12 = vld [vmem:[#allocation2 + $0x1] ss:$2 sm:$0xff]  ;;  %v474_v13 = vld [vmem:[#allocation2] ss:$2 sm:$0xff]  ;;  %453 = vst.msk [vmem:[#allocation6 + $0x11] sm:$0x1] %vm444_vm2, %v1995_v2  ;;  %917 = vmatpush.bf16.msrb.mxu2 %v1836_v45 }
  0x28   : > { %521 = vperm.xlu2 %1903, %v510_v12   ;;  %484 = vperm.xlu0 %1901, %v474_v13   ;;  %v551_v18 = vld [vmem:[#allocation2 + $0x2] ss:$2 sm:$0xff]  ;;  %v596_v24 = vld [vmem:[#allocation2 + $0x23] ss:$2 sm:$0xff]  ;;  %454 = vst.msk [vmem:[#allocation7] sm:$0x1] %vm444_vm2, %v1995_v2 }
  0x29   : > { %v480_v14 = vld [vmem:[#allocation2 + $0x30] ss:$2 sm:$0xff]  ;;  %v516_v17 = vld [vmem:[#allocation2 + $0x31] ss:$2 sm:$0xff]  ;;  %455 = vst.msk [vmem:[#allocation7 + $0x21] sm:$0x1] %vm444_vm2, %v1995_v2 }
  0x2a   : > { %v512_v15 = vld [vmem:[#allocation2 + $0x11] ss:$2 sm:$0xff]  ;;  %v476_v16 = vld [vmem:[#allocation2 + $0x10] ss:$2 sm:$0xff]  ;;  %450 = vst.msk [vmem:[#allocation5] sm:$0x1] %vm449_vm4, %v1995_v2 }
  0x2b   : > { %v557_v21 = vld [vmem:[#allocation2 + $0x32] ss:$2 sm:$0xff]  ;;  %v594_v23 = vld [vmem:[#allocation2 + $0x13] ss:$2 sm:$0xff]  ;;  %v592_v25 = vld [vmem:[#allocation2 + $0x3] ss:$2 sm:$0xff] }
  0x2c   : > { %v553_v22 = vld [vmem:[#allocation2 + $0x12] ss:$2 sm:$0xff]  ;;  %v598_v26 = vld [vmem:[#allocation2 + $0x33] ss:$2 sm:$0xff]  ;;  %451 = vst.msk [vmem:[#allocation5 + $0x9] sm:$0x1] %vm449_vm4, %v1995_v2 }
  0x2e   : > { %499 = vperm.xlu1 %1902, %v480_v14  }
  0x30   : > { %526 = vperm.xlu2 %1903, %v512_v15   ;;  %489 = vperm.xlu0 %1901, %v476_v16  }
  0x36   : > { %536 = vperm.xlu1 %1902, %v516_v17  }
  0x38   : > { %562 = vperm.xlu2 %1903, %v551_v18   ;;  %531 = vperm.xlu0 %1901, %v514_v19  }
  0x3e   : > { %572 = vperm.xlu1 %1902, %v555_v20  }
  0x40   : > { %577 = vperm.xlu2 %1903, %v557_v21   ;;  %567 = vperm.xlu0 %1901, %v553_v22  }
  0x46   : > { %608 = vperm.xlu1 %1902, %v594_v23  }
  0x48   : > { %613 = vperm.xlu2 %1903, %v596_v24   ;;  %603 = vperm.xlu0 %1901, %v592_v25  }
  0x50   : > { %618 = vperm.xlu0 %1901, %v598_v26  }
  0x82   : > { %v522_v27 = vpop.permute.xlu2 %521 }
  0x83   : > { %v542_v55 = vmul.f32 %v1904_v36, %v522_v27 }
  0x8a   : > { %v527_v28 = vpop.permute.xlu2 %526 }
  0x8b   : > { %v543_v56 = vmul.f32 %v1904_v36, %v527_v28 }
  0x92   : > { %v563_v31 = vpop.permute.xlu2 %562 }
  0x93   : > { %v583_v1 = vmul.f32 %v1905_v48, %v563_v31 }
  0x98   : > { %v495_v29 = vpop.permute.xlu1 %494 }
  0x99   : > { %v507_v49 = vmul.f32 %v1906_v42, %v495_v29 }
  0x9a   : > { %v485_v30 = vpop.permute.xlu0 %484  ;;  %v2137_v34 = vpop.permute.xlu2 %577 }
  0x9b   : > { %v505_v58 = vmul.f32 %v1906_v42, %v485_v30  ;;  %v586_v21 = vmul.f32 %v1905_v48, %v2137_v34 }
  0x9d   : > { %v546_v3 = vadd.f32 %v542_v55, %v505_v58  ;;  %v1909_v55 = vld [vmem:[%s2345_s4] ss:$0 sm:$0xff] }
  0x9f   : > { %v587_v13 = vadd.f32 %v583_v1, %v546_v3 }
  0xa0   : > { %v2132_v32 = vpop.permute.xlu1 %499 }
  0xa1   : > { %v508_v15 = vmul.f32 %v1906_v42, %v2132_v32 }
  0xa2   : > { %v490_v33 = vpop.permute.xlu0 %489  ;;  %v614_v51 = vpop.permute.xlu2 %613 }
  0xa3   : > { %v626_v59 = vmul.f32 %v1907_v50, %v614_v51  ;;  %v506_v60 = vmul.f32 %v1906_v42, %v490_v33  ;;  %v1839_v42 = vld [vmem:[%s2346_s5 + $0x38] sm:$0xff] }
  0xa4   : > { %953 = vmatpush.bf16.msrb.mxu3 %v1839_v42  ;;  %v1850_v42 = vld [vmem:[%s2350_s9 + $0x20] sm:$0xff] }
  0xa5   : > { %v547_v4 = vadd.f32 %v543_v56, %v506_v60 }
  0xa8   : > { %v537_v35 = vpop.permute.xlu1 %536  ;;  %954 = vmatpush.bf16.msrb.mxu3 %v1838_v46 }
  0xa9   : > { %v545_v11 = vmul.f32 %v1904_v36, %v537_v35 }
  0xaa   : > { %v532_v37 = vpop.permute.xlu0 %531 }
  0xab   : > { %v544_v43 = vmul.f32 %v1904_v36, %v532_v37  ;;  %v549_v18 = vadd.f32 %v545_v11, %v508_v15  ;;  %v1841_v15 = vld [vmem:[%s2348_s7 + $0x18] sm:$0xff] }
  0xad   : > { %v548_v53 = vadd.f32 %v544_v43, %v507_v49  ;;  %v590_v24 = vadd.f32 %v586_v21, %v549_v18  ;;  %v1835_v43 = vld [vmem:[%s2346_s5 + $0x18] sm:$0xff] }
  0xae   : > { %852 = vmatpush.bf16.msrb.mxu0 %v1835_v43  ;;  %v1848_v43 = vld [vmem:[%s2350_s9] sm:$0xff] }
  0xb0   : > { %v573_v52 = vpop.permute.xlu1 %572 }
  0xb1   : > { %v585_v54 = vmul.f32 %v1905_v48, %v573_v52 }
  0xb2   : > { %v568_v57 = vpop.permute.xlu0 %567  ;;  %853 = vmatpush.bf16.msrb.mxu0 %v1834_v47 }
  0xb3   : > { %v589_v62 = vadd.f32 %v585_v54, %v548_v53  ;;  %v584_v0 = vmul.f32 %v1905_v48, %v568_v57  ;;  %v1832_v48 = vld [vmem:[%s2346_s5] sm:$0xff] }
  0xb4   : > { %881 = vmatpush.bf16.msrb.mxu1 %v1832_v48 }
  0xb5   : > { %v630_v63 = vadd.f32 %v626_v59, %v589_v62  ;;  %v588_v8 = vadd.f32 %v584_v0, %v547_v4 }
  0xb7   : > { %v637_v5 = vadd.f32 %v1908_v61, %v630_v63 }
  0xb8   : > { %v609_v6 = vpop.permute.xlu1 %608 }
  0xb9   : > { %v641_v7 = vmax.f32 %v637_v5, 0.0  ;;  %v625_v9 = vmul.f32 %v1907_v50, %v609_v6 }
  0xba   : > { %v604_v10 = vpop.permute.xlu0 %603 }
  0xbb   : > { %646 = vst.msk [vmem:[#allocation3 + $0x11] sm:$0xff] %vm643_vm3, %v641_v7  ;;  %v629_v12 = vadd.f32 %v625_v9, %v588_v8  ;;  %v624_v14 = vmul.f32 %v1907_v50, %v604_v10 }
  0xbd   : > { %v636_v16 = vadd.f32 %v1908_v61, %v629_v12  ;;  %v628_v17 = vadd.f32 %v624_v14, %v587_v13  ;;  %v1843_v13 = vld [vmem:[%s2348_s7 + $0x10] sm:$0xff]  ;;  %v1842_v14 = vld [vmem:[%s2348_s7] sm:$0xff] }
  0xbf   : > { %v640_v19 = vmax.f32 %v636_v16, 0.0  ;;  %v635_v20 = vadd.f32 %v1908_v61, %v628_v17  ;;  %v1840_v16 = vld [vmem:[%s2348_s7 + $0x8] sm:$0xff] }
  0xc1   : > { %645 = vst.msk [vmem:[#allocation3 + $0x9] sm:$0xff] %vm643_vm3, %v640_v19  ;;  %v639_v22 = vmax.f32 %v635_v20, 0.0 }
  0xc2   : > { %v619_v23 = vpop.permute.xlu0 %618 }
  0xc3   : > { %644 = vst.msk [vmem:[#allocation3 + $0x1] sm:$0xff] %vm643_vm3, %v639_v22  ;;  %v627_v25 = vmul.f32 %v1907_v50, %v619_v23  ;;  %v1910_v23 = vld [vmem:[%s2347_s6] ss:$0 sm:$0xff] }
  0xc5   : > { %v631_v26 = vadd.f32 %v627_v25, %v590_v24 }
  0xc7   : > { %v638_v27 = vadd.f32 %v1908_v61, %v631_v26 }
  0xc9   : > { %v642_v28 = vmax.f32 %v638_v27, 0.0 }
  0xca   : > { %v658_v29 = vld [vmem:[#allocation3 + $0x1] ss:$2 sm:$0xff]  ;;  %v649_v30 = vld [vmem:[#allocation3] ss:$2 sm:$0xff] }
  0xcb   : > { %647 = vst.msk [vmem:[#allocation3 + $0x19] sm:$0xff] %vm643_vm3, %v642_v28  ;;  %v726_v31 = vld [vmem:[#allocation3 + $0x2] ss:$2 sm:$0xff]  ;;  %v767_v38 = vld [vmem:[#allocation3 + $0x3] ss:$2 sm:$0xff] }
  0xd2   : > { %v660_v32 = vld [vmem:[#allocation3 + $0x11] ss:$2 sm:$0xff]  ;;  %v651_v33 = vld [vmem:[#allocation3 + $0x10] ss:$2 sm:$0xff] }
  0xd3   : > { %v728_v35 = vld [vmem:[#allocation3 + $0x12] ss:$2 sm:$0xff]  ;;  %v666_v34 = vpack.c.bf16 %v660_v32, %v658_v29  ;;  %v656_v36 = vpack.c.bf16 %v651_v33, %v649_v30  ;;  %v769_v39 = vld [vmem:[#allocation3 + $0x13] ss:$2 sm:$0xff] }
  0xd4   : > { %v734_v37 = vpack.c.bf16 %v728_v35, %v726_v31  ;;  %v775_v40 = vpack.c.bf16 %v769_v39, %v767_v38  ;;  %v1851_v38 = vld [vmem:[%s2350_s9 + $0x28] sm:$0xff] }
  0xd5   : > { %1611 = vmatmul.msk.bf16.vlgmr.msra.gmra.mxu0 %vm643_vm3, %v666_v34  ;;  %1620 = vmatmul.msk.bf16.vlgmr.msra.gmra.mxu1 %vm643_vm3, %v656_v36  ;;  %v1847_v36 = vld [vmem:[%s2350_s9 + $0x38] sm:$0xff]  ;;  %v1849_v39 = vld [vmem:[%s2350_s9 + $0x8] sm:$0xff] }
  0xd6   : > { %1633 = vmatmul.msk.bf16.vlgmr.msra.gmra.mxu2 %vm643_vm3, %v734_v37  ;;  %1646 = vmatmul.msk.bf16.vlgmr.msra.gmra.mxu3 %vm643_vm3, %v775_v40  ;;  %v1845_v37 = vld [vmem:[%s2350_s9 + $0x18] sm:$0xff]  ;;  %v1846_v40 = vld [vmem:[%s2350_s9 + $0x30] sm:$0xff] }
  0xd7   : > { %1055 = vmatpush.bf16.msra.mxu2 %v1843_v13  ;;  %1077 = vmatpush.bf16.msra.mxu3 %v1842_v14  ;;  %v1912_v14 = vld [vmem:[%s2351_s10] ss:$0 sm:$0xff] }
  0xd8   : > { %995 = vmatpush.bf16.msra.mxu0 %v1841_v15  ;;  %1017 = vmatpush.bf16.msra.mxu1 %v1840_v16 }
 0x152   : > { %v691_v49 = vpop.f32.mrf.mxu0  ;;  %v720_v50 = vpop.f32.mrf.mxu1 }
 0x153   : > { %v721_v51 = vadd.f32 %v720_v50, %v691_v49 }
 0x159   : > { %v759_v52 = vpop.f32.mrf.mxu2  ;;  %v800_v53 = vpop.f32.mrf.mxu3 }
 0x15a   : > { %v764_v54 = vadd.f32 %v759_v52, %v721_v51  ;;  %v693_v57 = vpop.f32.mrf.mxu0  ;;  %v722_v58 = vpop.f32.mrf.mxu1 }
 0x15b   : > { %v723_v61 = vadd.f32 %v722_v58, %v693_v57 }
 0x15c   : > { %v805_v56 = vadd.f32 %v800_v53, %v764_v54 }
 0x15e   : > { %v810_v59 = vadd.f32 %v1909_v55, %v805_v56 }
 0x160   : > { %v812_v60 = vmax.f32 %v810_v59, 0.0 }
 0x161   : > { %v761_v62 = vpop.f32.mrf.mxu2  ;;  %v802_v0 = vpop.f32.mrf.mxu3 }
 0x162   : > { %814 = vst.msk [vmem:[#allocation4 + $0x1] sm:$0xff] %vm643_vm3, %v812_v60  ;;  %v765_v63 = vadd.f32 %v761_v62, %v723_v61 }
 0x164   : > { %v806_v1 = vadd.f32 %v802_v0, %v765_v63 }
 0x166   : > { %v811_v3 = vadd.f32 %v1909_v55, %v806_v1 }
 0x168   : > { %v813_v4 = vmax.f32 %v811_v3, 0.0 }
 0x16a   : > { %815 = vst.msk [vmem:[#allocation4 + $0x9] sm:$0xff] %vm643_vm3, %v813_v4 }
 0x171   : > { %v824_v5 = vld [vmem:[#allocation4 + $0x1] ss:$2 sm:$0xff]  ;;  %v817_v6 = vld [vmem:[#allocation4] ss:$2 sm:$0xff] }
 0x172   : > { %v888_v7 = vld [vmem:[#allocation4 + $0x2] ss:$2 sm:$0xff]  ;;  %v830_v8 = vpack.c.bf16 %v824_v5, %v824_v5  ;;  %v822_v9 = vpack.c.bf16 %v817_v6, %v817_v6  ;;  %v925_v11 = vld [vmem:[#allocation4 + $0x3] ss:$2 sm:$0xff]  ;;  %v1859_v5 = vld [vmem:[%s2352_s11 + $0x28] sm:$0xff] }
 0x173   : > { %v894_v10 = vpack.c.bf16 %v888_v7, %v888_v7  ;;  %v931_v12 = vpack.c.bf16 %v925_v11, %v925_v11  ;;  %v1857_v6 = vld [vmem:[%s2352_s11 + $0x8] sm:$0xff]  ;;  %v1855_v7 = vld [vmem:[%s2352_s11 + $0x38] sm:$0xff]  ;;  %v1852_v11 = vld [vmem:[%s2352_s11 + $0x10] sm:$0xff] }
 0x174   : > { %1659 = vmatmul.msk.bf16.vlgmr.msrb.gmra.mxu0 %vm643_vm3, %v830_v8  ;;  %1668 = vmatmul.msk.bf16.vlgmr.msrb.gmra.mxu1 %vm643_vm3, %v822_v9  ;;  %v1853_v8 = vld [vmem:[%s2352_s11 + $0x18] sm:$0xff]  ;;  %v1858_v9 = vld [vmem:[%s2352_s11 + $0x20] sm:$0xff] }
 0x175   : > { %1681 = vmatmul.msk.bf16.vlgmr.msrb.gmra.mxu2 %vm643_vm3, %v894_v10  ;;  %1694 = vmatmul.msk.bf16.vlgmr.msrb.gmra.mxu3 %vm643_vm3, %v931_v12  ;;  %v1854_v10 = vld [vmem:[%s2352_s11 + $0x30] sm:$0xff]  ;;  %v1856_v12 = vld [vmem:[%s2352_s11] sm:$0xff] }
 0x176   : > { %1125 = vmatpush.bf16.msrb.mxu0 %v1847_v36  ;;  %1154 = vmatpush.bf16.msrb.mxu1 %v1845_v37 }
 0x177   : > { %1209 = vmatpush.bf16.msrb.mxu2 %v1851_v38  ;;  %1238 = vmatpush.bf16.msrb.mxu3 %v1849_v39 }
 0x17a   : > { %1126 = vmatpush.bf16.msrb.mxu0 %v1846_v40  ;;  %1155 = vmatpush.bf16.msrb.mxu1 %v1844_v41 }
 0x17b   : > { %1210 = vmatpush.bf16.msrb.mxu2 %v1850_v42  ;;  %1239 = vmatpush.bf16.msrb.mxu3 %v1848_v43 }
 0x1f1   : > { %v855_v17 = vpop.f32.mrf.mxu0  ;;  %v883_v18 = vpop.f32.mrf.mxu1 }
 0x1f2   : > { %v884_v19 = vadd.f32 %v883_v18, %v855_v17 }
 0x1f8   : > { %v919_v20 = vpop.f32.mrf.mxu2  ;;  %v956_v21 = vpop.f32.mrf.mxu3 }
 0x1f9   : > { %v923_v22 = vadd.f32 %v919_v20, %v884_v19  ;;  %v857_v24 = vpop.f32.mrf.mxu0  ;;  %v885_v25 = vpop.f32.mrf.mxu1 }
 0x1fb   : > { %v960_v26 = vadd.f32 %v956_v21, %v923_v22 }
 0x1fd   : > { %v964_v27 = vadd.f32 %v1910_v23, %v960_v26 }
 0x1ff   : > { %v965_v2 = vmax.f32 %v964_v27, 0.0 }
 0x200   : > { %v921_v28 = vpop.f32.mrf.mxu2  ;;  %v958_v29 = vpop.f32.mrf.mxu3 }
 0x201   : > { %967 = vst.msk [vmem:[#allocation5 + $0x1] sm:$0xff] %vm966_vm5, %v965_v2 }
 0x208   : > { %v974_v30 = vld [vmem:[#allocation5] sm:$0xff] }
 0x209   : > { %v969_v31 = vld [vmem:[#allocation5 + $0x1] sm:$0xff]  ;;  %v978_v33 = vpack.c.bf16 %v974_v30, %v974_v30 }
 0x20a   : > { %v1030_v32 = vld [vmem:[#allocation5 + $0x2] sm:$0xff]  ;;  %v973_v35 = vpack.c.bf16 %v969_v31, %v969_v31 }
 0x20b   : > { %v1033_v34 = vpack.c.bf16 %v1030_v32, %v1030_v32  ;;  %1703 = vmatmul.msk.bf16.vlgmr.msra.gmra.mxu0 %vm966_vm5, %v978_v33 }
 0x20c   : > { %1708 = vmatmul.msk.bf16.vlgmr.msra.gmra.mxu1 %vm966_vm5, %v973_v35  ;;  %1715 = vmatmul.msk.bf16.vlgmr.msra.gmra.mxu2 %vm966_vm5, %v973_v35 }
 0x20d   : > { %1720 = vmatmul.msk.bf16.vlgmr.msra.gmra.mxu3 %vm966_vm5, %v1033_v34  ;;  %1414 = vmatpush.bf16.msra.mxu2 %v1859_v5 }
 0x20e   : > { %1451 = vmatpush.bf16.msra.mxu3 %v1857_v6  ;;  %1301 = vmatpush.bf16.msra.mxu0 %v1855_v7 }
 0x20f   : > { %1338 = vmatpush.bf16.msra.mxu1 %v1853_v8 }
 0x211   : > { %1415 = vmatpush.bf16.msra.mxu2 %v1858_v9 }
 0x212   : > { %1302 = vmatpush.bf16.msra.mxu0 %v1854_v10  ;;  %1452 = vmatpush.bf16.msra.mxu3 %v1856_v12 }
 0x213   : > { %1339 = vmatpush.bf16.msra.mxu1 %v1852_v11 }
 0x288   : > { %v997_v45 = vpop.f32.mrf.mxu0 }
 0x289   : > { %v1019_v46 = vpop.f32.mrf.mxu1 }
 0x28a   : > { %v1020_v47 = vadd.f32 %v1019_v46, %v997_v45 }
 0x28c   : > { %v1026_v48 = vadd.f32 %v1911_v44, %v1020_v47 }
 0x28e   : > { %v1027_v49 = vmax.f32 %v1026_v48, 0.0 }
 0x28f   : > { %v1057_v50 = vpop.f32.mrf.mxu2 }
 0x290   : > { %1029 = vst [vmem:[#allocation6 + $0x1] ss:$2 sm:$0xff] %v1027_v49  ;;  %v1079_v51 = vpop.f32.mrf.mxu3  ;;  %v999_v53 = vpop.f32.mrf.mxu0 }
 0x291   : > { %v1080_v52 = vadd.f32 %v1079_v51, %v1057_v50  ;;  %v1021_v54 = vpop.f32.mrf.mxu1 }
 0x293   : > { %v1083_v55 = vadd.f32 %v1911_v44, %v1080_v52  ;;  %v1913_v52 = vld [vmem:[#allocation9] ss:$0 sm:$0xff] }
 0x295   : > { %v1084_v56 = vmax.f32 %v1083_v55, 0.0 }
 0x297   : > { %1086 = vst [vmem:[#allocation6 + $0x2] ss:$2 sm:$0xff] %v1084_v56  ;;  %v1059_v57 = vpop.f32.mrf.mxu2 }
 0x298   : > { %v1081_v58 = vpop.f32.mrf.mxu3 }
 0x29e   : > { %v1096_v59 = vld [vmem:[#allocation6] sm:$0xff]  ;;  %v1097_v60 = vld [vmem:[#allocation6 + $0x8] sm:$0xff] }
 0x29f   : > { %v1088_v61 = vld [vmem:[#allocation6 + $0x1] sm:$0xff]  ;;  %v1103_v62 = vpack.c.bf16 %v1097_v60, %v1096_v59  ;;  %v1089_v63 = vld [vmem:[#allocation6 + $0x9] sm:$0xff] }
 0x2a0   : > { %v1173_v0 = vld [vmem:[#allocation6 + $0x2] sm:$0xff]  ;;  %v1174_v1 = vld [vmem:[#allocation6 + $0xa] sm:$0xff]  ;;  %v1095_v3 = vpack.c.bf16 %v1089_v63, %v1088_v61 }
 0x2a1   : > { %v1179_v4 = vpack.c.bf16 %v1174_v1, %v1173_v0  ;;  %1737 = vmatmul.msk.bf16.vlgmr.msrb.gmra.mxu0 %vm643_vm3, %v1103_v62 }
 0x2a2   : > { %1746 = vmatmul.msk.bf16.vlgmr.msrb.gmra.mxu1 %vm643_vm3, %v1095_v3  ;;  %1759 = vmatmul.msk.bf16.vlgmr.msrb.gmra.mxu2 %vm643_vm3, %v1095_v3 }
 0x2a3   : > { %1768 = vmatmul.msk.bf16.vlgmr.msrb.gmra.mxu3 %vm643_vm3, %v1179_v4 }
 0x31e   : > { %v1128_v13 = vpop.f32.mrf.mxu0 }
 0x31f   : > { %v1157_v15 = vpop.f32.mrf.mxu1 }
 0x320   : > { %v1158_v16 = vadd.f32 %v1157_v15, %v1128_v13 }
 0x322   : > { %v1165_v17 = vadd.f32 %v1912_v14, %v1158_v16 }
 0x324   : > { %v1167_v18 = vmax.f32 %v1165_v17, 0.0 }
 0x325   : > { %v1212_v19 = vpop.f32.mrf.mxu2 }
 0x326   : > { %1170 = vst [vmem:[#allocation7 + $0x1] ss:$2 sm:$0xff] %v1167_v18  ;;  %v1241_v20 = vpop.f32.mrf.mxu3  ;;  %v1130_v21 = vpop.f32.mrf.mxu0 }
 0x327   : > { %v1242_v22 = vadd.f32 %v1241_v20, %v1212_v19  ;;  %v1159_v23 = vpop.f32.mrf.mxu1 }
 0x328   : > { %v1160_v24 = vadd.f32 %v1159_v23, %v1130_v21 }
 0x329   : > { %v1246_v25 = vadd.f32 %v1912_v14, %v1242_v22 }
 0x32a   : > { %v1166_v26 = vadd.f32 %v1912_v14, %v1160_v24 }
 0x32b   : > { %v1248_v27 = vmax.f32 %v1246_v25, 0.0 }
 0x32c   : > { %v1168_v2 = vmax.f32 %v1166_v26, 0.0 }
 0x32d   : > { %1251 = vst [vmem:[#allocation7 + $0x2] ss:$2 sm:$0xff] %v1248_v27  ;;  %v1214_v28 = vpop.f32.mrf.mxu2 }
 0x32e   : > { %1172 = vst [vmem:[#allocation7 + $0x11] ss:$2 sm:$0xff] %v1168_v2  ;;  %v1243_v29 = vpop.f32.mrf.mxu3 }
 0x32f   : > { %v1244_v30 = vadd.f32 %v1243_v29, %v1214_v28 }
 0x331   : > { %v1247_v31 = vadd.f32 %v1912_v14, %v1244_v30 }
 0x333   : > { %v1249_v32 = vmax.f32 %v1247_v31, 0.0 }
 0x334   : > { %v1266_v33 = vld [vmem:[#allocation7] sm:$0xff]  ;;  %v1267_v35 = vld [vmem:[#allocation7 + $0x8] sm:$0xff] }
 0x335   : > { %v1255_v34 = vld [vmem:[#allocation7 + $0x1] sm:$0xff]  ;;  %1253 = vst [vmem:[#allocation7 + $0x12] ss:$2 sm:$0xff] %v1249_v32  ;;  %v1275_v36 = vpack.c.bf16 %v1267_v35, %v1266_v33  ;;  %v1256_v37 = vld [vmem:[#allocation7 + $0x9] sm:$0xff] }
 0x336   : > { %v1369_v38 = vld [vmem:[#allocation7 + $0x2] sm:$0xff]  ;;  %v1370_v39 = vld [vmem:[#allocation7 + $0xa] sm:$0xff]  ;;  %v1264_v40 = vpack.c.bf16 %v1256_v37, %v1255_v34 }
 0x337   : > { %v1377_v41 = vpack.c.bf16 %v1370_v39, %v1369_v38  ;;  %1785 = vmatmul.msk.bf16.vlgmr.msra.gmra.mxu0 %vm643_vm3, %v1275_v36 }
 0x338   : > { %1795 = vmatmul.msk.bf16.vlgmr.msra.gmra.mxu1 %vm643_vm3, %v1264_v40  ;;  %1809 = vmatmul.msk.bf16.vlgmr.msra.gmra.mxu2 %vm643_vm3, %v1264_v40 }
 0x339   : > { %1819 = vmatmul.msk.bf16.vlgmr.msra.gmra.mxu3 %vm643_vm3, %v1377_v41 }
 0x33c   : > { %v1268_v42 = vld [vmem:[#allocation7 + $0x10] sm:$0xff]  ;;  %v1269_v43 = vld [vmem:[#allocation7 + $0x18] sm:$0xff] }
 0x33d   : > { %v1257_v44 = vld [vmem:[#allocation7 + $0x11] sm:$0xff]  ;;  %v1258_v45 = vld [vmem:[#allocation7 + $0x19] sm:$0xff]  ;;  %v1276_v48 = vpack.c.bf16 %v1269_v43, %v1268_v42 }
 0x33e   : > { %v1371_v46 = vld [vmem:[#allocation7 + $0x12] sm:$0xff]  ;;  %v1372_v47 = vld [vmem:[#allocation7 + $0x1a] sm:$0xff]  ;;  %v1265_v49 = vpack.c.bf16 %v1258_v45, %v1257_v44 }
 0x33f   : > { %v1378_v50 = vpack.c.bf16 %v1372_v47, %v1371_v46 }
 0x347   : > { %1786 = vmatmul.msk.bf16.gmra.mxu0 %vm643_vm3, %v1276_v48 }
 0x348   : > { %1796 = vmatmul.msk.bf16.gmra.mxu1 %vm643_vm3, %v1265_v49  ;;  %1810 = vmatmul.msk.bf16.gmra.mxu2 %vm643_vm3, %v1265_v49 }
 0x349   : > { %1820 = vmatmul.msk.bf16.gmra.mxu3 %vm643_vm3, %v1378_v50 }
 0x3b4   : > { %v1304_v51 = vpop.f32.mrf.mxu0 }
 0x3b5   : > { %v1341_v53 = vpop.f32.mrf.mxu1 }
 0x3b6   : > { %v1342_v54 = vadd.f32 %v1341_v53, %v1304_v51 }
 0x3b8   : > { %v1354_v55 = vadd.f32 %v1913_v52, %v1342_v54 }
 0x3ba   : > { %1914 = vtanh.f32 %v1354_v55 }
 0x3bb   : > { %v1417_v56 = vpop.f32.mrf.mxu2 }
 0x3bc   : > { %v1306_v57 = vpop.f32.mrf.mxu0  ;;  %v1454_v58 = vpop.f32.mrf.mxu3 }
 0x3bd   : > { %v1343_v59 = vpop.f32.mrf.mxu1  ;;  %v1455_v60 = vadd.f32 %v1454_v58, %v1417_v56 }
 0x3be   : > { %v1344_v61 = vadd.f32 %v1343_v59, %v1306_v57 }
 0x3bf   : > { %v1464_v62 = vadd.f32 %v1913_v52, %v1455_v60 }
 0x3c0   : > { %v1915_v63 = vpop.eup %1914  ;;  %v1355_v0 = vadd.f32 %v1913_v52, %v1344_v61 }
 0x3c1   : > { %1362 = vst [vmem:[#allocation8] ss:$2 sm:$0xff] %v1915_v63  ;;  %1916 = vtanh.f32 %v1464_v62 }
 0x3c2   : > { %1918 = vtanh.f32 %v1355_v0 }
 0x3c3   : > { %v1419_v1 = vpop.f32.mrf.mxu2 }
 0x3c4   : > { %v1309_v3 = vpop.f32.mrf.mxu0  ;;  %v1456_v4 = vpop.f32.mrf.mxu3 }
 0x3c5   : > { %v1346_v5 = vpop.f32.mrf.mxu1  ;;  %v1457_v6 = vadd.f32 %v1456_v4, %v1419_v1 }
 0x3c6   : > { %v1347_v7 = vadd.f32 %v1346_v5, %v1309_v3 }
 0x3c7   : > { %v1917_v8 = vpop.eup %1916  ;;  %v1465_v9 = vadd.f32 %v1913_v52, %v1457_v6 }
 0x3c8   : > { %v1919_v10 = vpop.eup %1918  ;;  %1473 = vst [vmem:[#allocation8 + $0x1] ss:$2 sm:$0xff] %v1917_v8  ;;  %v1356_v11 = vadd.f32 %v1913_v52, %v1347_v7 }
 0x3c9   : > { %1364 = vst [vmem:[#allocation8 + $0x10] ss:$2 sm:$0xff] %v1919_v10  ;;  %1920 = vtanh.f32 %v1465_v9 }
 0x3ca   : > { %1922 = vtanh.f32 %v1356_v11 }
 0x3cb   : > { %v1422_v12 = vpop.f32.mrf.mxu2 }
 0x3cc   : > { %v1311_v13 = vpop.f32.mrf.mxu0  ;;  %v1459_v14 = vpop.f32.mrf.mxu3 }
 0x3cd   : > { %v1348_v15 = vpop.f32.mrf.mxu1  ;;  %v1460_v16 = vadd.f32 %v1459_v14, %v1422_v12 }
 0x3ce   : > { %v1349_v17 = vadd.f32 %v1348_v15, %v1311_v13 }
 0x3cf   : > { %v1921_v18 = vpop.eup %1920  ;;  %v1466_v19 = vadd.f32 %v1913_v52, %v1460_v16  ;;  %v1480_v20 = vld [vmem:[#allocation8] sm:$0xff]  ;;  %v1481_v2 = vld [vmem:[#allocation8 + $0x8] sm:$0xff] }
 0x3d0   : > { %v1923_v21 = vpop.eup %1922  ;;  %1475 = vst [vmem:[#allocation8 + $0x11] ss:$2 sm:$0xff] %v1921_v18  ;;  %v1357_v22 = vadd.f32 %v1913_v52, %v1349_v17  ;;  %1488 = vxpose.xlu1.b32.start [1/8] (short) (narrow) %v1480_v20, 8 }
 0x3d1   : > { %1366 = vst [vmem:[#allocation8 + $0x20] ss:$2 sm:$0xff] %v1923_v21  ;;  %1924 = vtanh.f32 %v1466_v19 }
 0x3d2   : > { %1926 = vtanh.f32 %v1357_v22 }
 0x3d3   : > { %v1424_v23 = vpop.f32.mrf.mxu2 }
 0x3d4   : > { %v1461_v24 = vpop.f32.mrf.mxu3 }
 0x3d5   : > { %v1462_v25 = vadd.f32 %v1461_v24, %v1424_v23 }
 0x3d7   : > { %v1925_v26 = vpop.eup %1924  ;;  %v1467_v27 = vadd.f32 %v1913_v52, %v1462_v25  ;;  %v1482_v30 = vld [vmem:[#allocation8 + $0x10] sm:$0xff]  ;;  %v1483_v31 = vld [vmem:[#allocation8 + $0x18] sm:$0xff] }
 0x3d8   : > { %v1927_v28 = vpop.eup %1926  ;;  %1477 = vst [vmem:[#allocation8 + $0x21] ss:$2 sm:$0xff] %v1925_v26  ;;  %1489 = vxpose.xlu1.b32.cont [2/8] (short) (narrow) %v1481_v2, 8 }
 0x3d9   : > { %1368 = vst [vmem:[#allocation8 + $0x30] ss:$2 sm:$0xff] %v1927_v28  ;;  %1928 = vtanh.f32 %v1467_v27 }
 0x3df   : > { %v1929_v29 = vpop.eup %1928  ;;  %v1484_v32 = vld [vmem:[#allocation8 + $0x20] sm:$0xff]  ;;  %v1485_v33 = vld [vmem:[#allocation8 + $0x28] sm:$0xff] }
 0x3e0   : > { %1479 = vst [vmem:[#allocation8 + $0x31] ss:$2 sm:$0xff] %v1929_v29  ;;  %1490 = vxpose.xlu1.b32.cont [3/8] (short) (narrow) %v1482_v30, 8 }
 0x3e7   : > { %v1486_v35 = vld [vmem:[#allocation8 + $0x30] sm:$0xff]  ;;  %v1487_v34 = vld [vmem:[#allocation8 + $0x38] sm:$0xff] }
 0x3e8   : > { %1491 = vxpose.xlu1.b32.cont [4/8] (short) (narrow) %v1483_v31, 8 }
 0x3f0   : > { %1492 = vxpose.xlu1.b32.cont [5/8] (short) (narrow) %v1484_v32, 8 }
 0x3f8   : > { %1493 = vxpose.xlu1.b32.cont [6/8] (short) (narrow) %v1485_v33, 8 }
 0x400   : > { %1494 = vxpose.xlu1.b32.cont [7/8] (short) (narrow) %v1486_v35, 8 }
 0x408   : > { %1495 = vxpose.xlu1.b32.end [8/8] (short) (narrow) %v1487_v34, 8 }
 0x474   : > { %v1504_v36 = vpop.trf.xlu1 }
 0x475   : > { %1521 = vst.msk [vmem:[%s434_s21] sm:$0x1] %vm1520_vm6, %v1504_v36 }
 0x476   : > { %1957 = shalt.err (!%p1954_p3)
}
 0x477   : > { %1860 = dma.vmem_to_hbm [thread:$0]  (%p2107_p5), %s1534_s22, 16, %s1536_s23, %s1523_s0  }
 0x478 PF: > { %p1866_p4 = scmp.ge.s32.totalorder %s1992_s30, 2  ;;  %s1547_s26 = sand.u32 1, %s1980_s27  }
 0x479   : > { %s1548_s1 = scalar_lea.sflag [#allocation11], %s1547_s26 }
 0x47a   : > { %p1863_p7 = pnand %p1866_p4, %p2111_p6 }
 0x47c   : > { %p1864_p8 = pneg %p1863_p7 }
 0x47e   : > { %1975 = dma.done.wait (%p1864_p8), %s1548_s1, 16  }
 0x47f   : > { %1977 = vsyncadd (%p1864_p8), %s1548_s1, 4294967280  ;;  %p25_p9 = scmp.ge.s32.totalorder %s2094_s15, 4   ;;  %s2363_s27 = smov %s1984_s28 }
 0x480   : > { %s2364_s28 = smov %s1988_s29  ;;  %s2365_s29 = smov %s2105_s18 }
 0x481   : > { %s2366_s30 = smov %s2094_s15  ;;  %27 = sbr.rel (!%p25_p9) target bundleno = 7 (0x7), region = 163 }
 0x486   :  { %1553 = vsyncpa [#allocation11], 1 }
 0x487   :  { %1555 = vsyncpa [#allocation11 + $0x1], 1 }

</bundles_post_ra>
